<compile_context>
chip_gen: v7x
topology: tpu7x:2x2x1
jax: 0.10.0
libtpu: 0.0.40
codegen_flags: <defaults>
</compile_context>

<pallas_src>
import functools

import jax
import jax.numpy as jnp
from jax.experimental import pallas as pl
from jax.experimental.pallas import tpu as pltpu

N_CLASSES = 10
NOISE_DIM = 100          # "input_dim" in the PyTorch module
IMG_SHAPE = 28 * 28      # 784
H1, H2 = 256, 512
K1 = 128                 # layer-1 contraction, zero-padded to one lane tile


def _round_up(x, m):
    return (x + m - 1) // m * m


def _cdiv(a, b):
    return -(-a // b)


def generator_kernel(lab_ref, x_ref, w1_ref, b1_ref, w2_ref, b2_ref,
                     w3_ref, b3_ref, out_ref):
    # Build the layer-1 input in-kernel. x_ref holds the noise zero-padded to
    # K1 lanes (bf16); the label's one-hot lands at column NOISE_DIM + label
    # via an iota compare. The embedding is folded into W1 rows 100..109, so
    # one (TB,128)x(128,256) MXU pass covers noise + label.
    lab = lab_ref[...]                                          # (TB, 1) int32
    col = jax.lax.broadcasted_iota(jnp.int32, x_ref.shape, 1)   # (TB, K1)
    onehot = (col == lab + NOISE_DIM).astype(jnp.bfloat16)
    x1 = x_ref[...] + onehot                                    # (TB, K1) bf16

    # Layer 1: Linear(110->256) (folded/padded) + LeakyReLU(0.2).
    h = jnp.dot(x1, w1_ref[...],
                preferred_element_type=jnp.float32) + b1_ref[...]
    h = jnp.maximum(h, 0.2 * h)                                 # LeakyReLU, 2 VPU ops

    # Layer 2: Linear(256, 512) + LeakyReLU(0.2). Cast to bf16 only at the dot.
    h = jnp.dot(h.astype(jnp.bfloat16), w2_ref[...],
                preferred_element_type=jnp.float32) + b2_ref[...]
    h = jnp.maximum(h, 0.2 * h)

    # Layer 3: Linear(512, 784) + Tanh, stored bf16 (halves writeback bytes).
    h = jnp.dot(h.astype(jnp.bfloat16), w3_ref[...],
                preferred_element_type=jnp.float32) + b3_ref[...]
    out_ref[...] = jnp.tanh(h).astype(out_ref.dtype)


def init_params(key):
    ks = jax.random.split(key, 7)
    scale = 0.05
    return dict(
        emb=jax.random.normal(ks[0], (N_CLASSES, N_CLASSES), jnp.float32),
        w1=scale * jax.random.normal(ks[1], (NOISE_DIM + N_CLASSES, H1), jnp.float32),
        b1=scale * jax.random.normal(ks[2], (H1,), jnp.float32),
        w2=scale * jax.random.normal(ks[3], (H1, H2), jnp.float32),
        b2=scale * jax.random.normal(ks[4], (H2,), jnp.float32),
        w3=scale * jax.random.normal(ks[5], (H2, IMG_SHAPE), jnp.float32),
        b3=scale * jax.random.normal(ks[6], (IMG_SHAPE,), jnp.float32),
    )


def prepare_inference_params(params):
    """One-time prep (call at model-load, NOT per forward):
    fold the embedding into layer 1, pad K to 128, cast weights to bf16."""
    w1n = params["w1"][:NOISE_DIM]                          # (100, 256)
    w1l = params["w1"][NOISE_DIM:]                          # (10, 256)
    w_lab = params["emb"] @ w1l                             # (10, 256), f32 fold
    w1_full = jnp.zeros((K1, H1), jnp.float32)
    w1_full = w1_full.at[:NOISE_DIM].set(w1n)
    w1_full = w1_full.at[NOISE_DIM:NOISE_DIM + N_CLASSES].set(w_lab)
    return dict(
        w1=w1_full.astype(jnp.bfloat16),
        b1=params["b1"].reshape(1, H1).astype(jnp.float32),
        w2=params["w2"].astype(jnp.bfloat16),
        b2=params["b2"].reshape(1, H2).astype(jnp.float32),
        w3=params["w3"].astype(jnp.bfloat16),
        b3=params["b3"].reshape(1, IMG_SHAPE).astype(jnp.float32),
    )


def _choose_batch_tiling(B, block_b):
    """Batch tile and padded batch: bound padding to <8 rows past ceil-div and
    use >=2 grid steps when there is enough work (v7x megacore sharding)."""
    if B <= 16:
        n_tiles = 1
    else:
        n_tiles = max(_cdiv(B, block_b), 2)
    tb = _round_up(_cdiv(B, n_tiles), 8)
    return tb, tb * n_tiles


def generator_forward(label, noise, prepared, *, block_b=256):
    """label: (B,) int32 in [0, n_classes); noise: (B, 100) f32.
    Returns (B, 784) bf16 images in [-1, 1]."""
    B = noise.shape[0]
    TB, B_pad = _choose_batch_tiling(B, block_b)

    # Glue (fuses under jit into two tiny ops): zero-pad noise to one 128-lane
    # tile + bf16 cast, and pad/reshape labels. The one-hot / concat is built
    # inside the kernel from the raw labels.
    # Note: noise is quantized to bf16 before layer 1 (f32 accumulation kept).
    x = jnp.pad(noise, ((0, B_pad - B), (0, K1 - NOISE_DIM))).astype(jnp.bfloat16)
    lab = jnp.pad(label.astype(jnp.int32), (0, B_pad - B)).reshape(B_pad, 1)

    resident = lambda i: (0, 0)     # constant block index -> weights DMA'd once

    out = pl.pallas_call(
        generator_kernel,
        out_shape=jax.ShapeDtypeStruct((B_pad, IMG_SHAPE), jnp.bfloat16),
        grid_spec=pltpu.PrefetchScalarGridSpec(
            num_scalar_prefetch=0,
            grid=(B_pad // TB,),
            in_specs=[
                pl.BlockSpec((TB, 1), lambda i: (i, 0)),    # labels, per-tile
                pl.BlockSpec((TB, K1), lambda i: (i, 0)),   # padded noise, per-tile
                pl.BlockSpec((K1, H1), resident),           # W1 (emb folded, K-padded)
                pl.BlockSpec((1, H1), resident),            # b1
                pl.BlockSpec((H1, H2), resident),           # W2
                pl.BlockSpec((1, H2), resident),            # b2
                pl.BlockSpec((H2, IMG_SHAPE), resident),    # W3
                pl.BlockSpec((1, IMG_SHAPE), resident),     # b3
            ],
            out_specs=pl.BlockSpec((TB, IMG_SHAPE), lambda i: (i, 0)),
        ),
        compiler_params=pltpu.CompilerParams(
            dimension_semantics=("parallel",),              # megacore on v7x
        ),
    )(lab, x, prepared["w1"], prepared["b1"], prepared["w2"], prepared["b2"],
      prepared["w3"], prepared["b3"])
    return out[:B]


generator_forward_jit = jax.jit(generator_forward, static_argnames=("block_b",))


def reference_forward(label, noise, params):
    lab = params["emb"][label]
    x = jnp.concatenate([noise, lab], axis=1)
    h = x @ params["w1"] + params["b1"]
    h = jnp.where(h > 0, h, 0.2 * h)
    h = h @ params["w2"] + params["b2"]
    h = jnp.where(h > 0, h, 0.2 * h)
    return jnp.tanh(h @ params["w3"] + params["b3"])


if __name__ == "__main__":
    key = jax.random.PRNGKey(0)
    k_param, k_lab, k_noise = jax.random.split(key, 3)

    B = 8
    params = init_params(k_param)
    label = jax.random.randint(k_lab, (B,), 0, N_CLASSES, dtype=jnp.int32)
    noise = jax.random.normal(k_noise, (B, NOISE_DIM), dtype=jnp.float32)

    # Weight prep happens ONCE (model-load time), outside the jitted forward.
    prepared = jax.tree_util.tree_map(jax.block_until_ready,
                                      prepare_inference_params(params))

    out = generator_forward_jit(label, noise, prepared)
    out = jax.block_until_ready(out)

    ref = reference_forward(label, noise, params)
    out_f32 = out.astype(jnp.float32)
    assert out.shape == (B, IMG_SHAPE)
    assert out.dtype == jnp.bfloat16
    # Loose tolerance: bf16 weights/inputs/output with f32 accumulation.
    assert jnp.max(jnp.abs(out_f32 - ref)) < 5e-2
    assert jnp.all(jnp.abs(out_f32) <= 1.0)

    print("KERNEL_OK")
</pallas_src>

<mosaic_0001>
module attributes {stable_mosaic.version = 11 : i64} {
  func.func @generator_kernel(%arg0: i32, %arg1: memref<8x1xi32, #tpu.memory_space<vmem>>, %arg2: memref<8x128xbf16, #tpu.memory_space<vmem>>, %arg3: memref<128x256xbf16, #tpu.memory_space<vmem>>, %arg4: memref<1x256xf32, #tpu.memory_space<vmem>>, %arg5: memref<256x512xbf16, #tpu.memory_space<vmem>>, %arg6: memref<1x512xf32, #tpu.memory_space<vmem>>, %arg7: memref<512x784xbf16, #tpu.memory_space<vmem>>, %arg8: memref<1x784xf32, #tpu.memory_space<vmem>>, %arg9: memref<8x784xbf16, #tpu.memory_space<vmem>>) attributes {dimension_semantics = [#tpu.dimension_semantics<parallel>], iteration_bounds = array<i64: 1>, scalar_prefetch = 0 : i64, scratch_operands = 0 : i64, tpu.core_type = #tpu.core_type<tc>, window_params = [{transform_indices = @transform_0, window_bounds = array<i64: 8, 1>}, {transform_indices = @transform_1, window_bounds = array<i64: 8, 128>}, {pipeline_mode = #tpu.pipeline_mode<synchronous>, transform_indices = @transform_2, window_bounds = array<i64: 128, 256>}, {pipeline_mode = #tpu.pipeline_mode<synchronous>, transform_indices = @transform_3, window_bounds = array<i64: 1, 256>}, {pipeline_mode = #tpu.pipeline_mode<synchronous>, transform_indices = @transform_4, window_bounds = array<i64: 256, 512>}, {pipeline_mode = #tpu.pipeline_mode<synchronous>, transform_indices = @transform_5, window_bounds = array<i64: 1, 512>}, {pipeline_mode = #tpu.pipeline_mode<synchronous>, transform_indices = @transform_6, window_bounds = array<i64: 512, 784>}, {pipeline_mode = #tpu.pipeline_mode<synchronous>, transform_indices = @transform_7, window_bounds = array<i64: 1, 784>}, {transform_indices = @transform_8, window_bounds = array<i64: 8, 784>}]} {
    %c0 = arith.constant 0 : index
    %c0_0 = arith.constant 0 : index
    %0 = vector.load %arg1[%c0, %c0_0] : memref<8x1xi32, #tpu.memory_space<vmem>>, vector<8x1xi32>
    %1 = tpu.iota {dimensions = array<i32: 1>} : vector<8x128xi32>
    %c100_i32 = arith.constant 100 : i32
    %2 = vector.broadcast %c100_i32 : i32 to vector<8x1xi32>
    %3 = arith.addi %0, %2 : vector<8x1xi32>
    %4 = vector.broadcast %3 : vector<8x1xi32> to vector<8x128xi32>
    %5 = arith.cmpi eq, %1, %4 : vector<8x128xi32>
    %6 = arith.extui %5 : vector<8x128xi1> to vector<8x128xi32>
    %7 = arith.sitofp %6 : vector<8x128xi32> to vector<8x128xf32>
    %8 = arith.truncf %7 : vector<8x128xf32> to vector<8x128xbf16>
    %c0_1 = arith.constant 0 : index
    %c0_2 = arith.constant 0 : index
    %9 = vector.load %arg2[%c0_1, %c0_2] : memref<8x128xbf16, #tpu.memory_space<vmem>>, vector<8x128xbf16>
    %10 = arith.addf %9, %8 : vector<8x128xbf16>
    %c0_3 = arith.constant 0 : index
    %c0_4 = arith.constant 0 : index
    %11 = vector.load %arg3[%c0_3, %c0_4] : memref<128x256xbf16, #tpu.memory_space<vmem>>, vector<128x256xbf16>
    %cst = arith.constant dense<0.000000e+00> : vector<8x256xf32>
    %12 = tpu.matmul %10, %11, %cst {dimension_numbers = #tpu.dot_dimension_numbers<[1], [0], [0], [1], [0, 0, 1, 1], [], []>} : vector<8x128xbf16>, vector<128x256xbf16>, vector<8x256xf32> -> vector<8x256xf32>
    %c0_5 = arith.constant 0 : index
    %c0_6 = arith.constant 0 : index
    %13 = vector.load %arg4[%c0_5, %c0_6] : memref<1x256xf32, #tpu.memory_space<vmem>>, vector<1x256xf32>
    %14 = vector.broadcast %13 : vector<1x256xf32> to vector<8x256xf32>
    %15 = arith.addf %12, %14 : vector<8x256xf32>
    %cst_7 = arith.constant 2.000000e-01 : f32
    %16 = vector.broadcast %cst_7 : f32 to vector<8x256xf32>
    %17 = arith.mulf %16, %15 : vector<8x256xf32>
    %18 = arith.maximumf %15, %17 : vector<8x256xf32>
    %19 = arith.truncf %18 : vector<8x256xf32> to vector<8x256xbf16>
    %c0_8 = arith.constant 0 : index
    %c0_9 = arith.constant 0 : index
    %20 = vector.load %arg5[%c0_8, %c0_9] : memref<256x512xbf16, #tpu.memory_space<vmem>>, vector<256x512xbf16>
    %cst_10 = arith.constant dense<0.000000e+00> : vector<8x512xf32>
    %21 = tpu.matmul %19, %20, %cst_10 {dimension_numbers = #tpu.dot_dimension_numbers<[1], [0], [0], [1], [0, 0, 1, 1], [], []>} : vector<8x256xbf16>, vector<256x512xbf16>, vector<8x512xf32> -> vector<8x512xf32>
    %c0_11 = arith.constant 0 : index
    %c0_12 = arith.constant 0 : index
    %22 = vector.load %arg6[%c0_11, %c0_12] : memref<1x512xf32, #tpu.memory_space<vmem>>, vector<1x512xf32>
    %23 = vector.broadcast %22 : vector<1x512xf32> to vector<8x512xf32>
    %24 = arith.addf %21, %23 : vector<8x512xf32>
    %cst_13 = arith.constant 2.000000e-01 : f32
    %25 = vector.broadcast %cst_13 : f32 to vector<8x512xf32>
    %26 = arith.mulf %25, %24 : vector<8x512xf32>
    %27 = arith.maximumf %24, %26 : vector<8x512xf32>
    %28 = arith.truncf %27 : vector<8x512xf32> to vector<8x512xbf16>
    %c0_14 = arith.constant 0 : index
    %c0_15 = arith.constant 0 : index
    %29 = vector.load %arg7[%c0_14, %c0_15] : memref<512x784xbf16, #tpu.memory_space<vmem>>, vector<512x784xbf16>
    %cst_16 = arith.constant dense<0.000000e+00> : vector<8x784xf32>
    %30 = tpu.matmul %28, %29, %cst_16 {dimension_numbers = #tpu.dot_dimension_numbers<[1], [0], [0], [1], [0, 0, 1, 1], [], []>} : vector<8x512xbf16>, vector<512x784xbf16>, vector<8x784xf32> -> vector<8x784xf32>
    %c0_17 = arith.constant 0 : index
    %c0_18 = arith.constant 0 : index
    %31 = vector.load %arg8[%c0_17, %c0_18] : memref<1x784xf32, #tpu.memory_space<vmem>>, vector<1x784xf32>
    %32 = vector.broadcast %31 : vector<1x784xf32> to vector<8x784xf32>
    %33 = arith.addf %30, %32 : vector<8x784xf32>
    %34 = math.tanh %33 : vector<8x784xf32>
    %35 = arith.truncf %34 : vector<8x784xf32> to vector<8x784xbf16>
    %c0_19 = arith.constant 0 : index
    %c0_20 = arith.constant 0 : index
    %36 = vector.load %arg9[%c0_19, %c0_20] : memref<8x784xbf16, #tpu.memory_space<vmem>>, vector<8x784xbf16>
    tpu.vector_store %arg9[%c0_19, %c0_20], %35 {strides = array<i32>} : memref<8x784xbf16, #tpu.memory_space<vmem>>, vector<8x784xbf16>,
    return
  }
  func.func @transform_0(%arg0: i32) -> (i32, i32) {
    %c0_i32 = arith.constant 0 : i32
    %c0_i32_0 = arith.constant 0 : i32
    return %arg0, %c0_i32 : i32, i32
  }
  func.func @transform_1(%arg0: i32) -> (i32, i32) {
    %c0_i32 = arith.constant 0 : i32
    %c0_i32_0 = arith.constant 0 : i32
    return %arg0, %c0_i32 : i32, i32
  }
  func.func @transform_2(%arg0: i32) -> (i32, i32) {
    %c0_i32 = arith.constant 0 : i32
    %c0_i32_0 = arith.constant 0 : i32
    %c0_i32_1 = arith.constant 0 : i32
    return %c0_i32, %c0_i32_0 : i32, i32
  }
  func.func @transform_3(%arg0: i32) -> (i32, i32) {
    %c0_i32 = arith.constant 0 : i32
    %c0_i32_0 = arith.constant 0 : i32
    %c0_i32_1 = arith.constant 0 : i32
    return %c0_i32, %c0_i32_0 : i32, i32
  }
  func.func @transform_4(%arg0: i32) -> (i32, i32) {
    %c0_i32 = arith.constant 0 : i32
    %c0_i32_0 = arith.constant 0 : i32
    %c0_i32_1 = arith.constant 0 : i32
    return %c0_i32, %c0_i32_0 : i32, i32
  }
  func.func @transform_5(%arg0: i32) -> (i32, i32) {
    %c0_i32 = arith.constant 0 : i32
    %c0_i32_0 = arith.constant 0 : i32
    %c0_i32_1 = arith.constant 0 : i32
    return %c0_i32, %c0_i32_0 : i32, i32
  }
  func.func @transform_6(%arg0: i32) -> (i32, i32) {
    %c0_i32 = arith.constant 0 : i32
    %c0_i32_0 = arith.constant 0 : i32
    %c0_i32_1 = arith.constant 0 : i32
    return %c0_i32, %c0_i32_0 : i32, i32
  }
  func.func @transform_7(%arg0: i32) -> (i32, i32) {
    %c0_i32 = arith.constant 0 : i32
    %c0_i32_0 = arith.constant 0 : i32
    %c0_i32_1 = arith.constant 0 : i32
    return %c0_i32, %c0_i32_0 : i32, i32
  }
  func.func @transform_8(%arg0: i32) -> (i32, i32) {
    %c0_i32 = arith.constant 0 : i32
    %c0_i32_0 = arith.constant 0 : i32
    return %arg0, %c0_i32 : i32, i32
  }
}

</mosaic_0001>

<bundles_post_ra>
// kernel: generator_forward.1
= control target key start
LH: loop header
LB: loop body
LE: loop exit
PB: predicated region body
PF: predicated region fallthrough
CT: control target
= control target key end

     0   :  { %v3382_v1 = vmov 0   ;;  %v32_v47 = vlaneseq  ;;  %v3383_v51 = vmov 0.0   ;;  %s4431_s0 = inlined_call_operand.vmem [shape: s32[8,1], index: 0, kind: input, shape index: {}]   ;;  %s4432_s1 = inlined_call_operand.vmem [shape: bf16[8,128], index: 1, kind: input, shape index: {}]   ;;  %s4433_s2 = inlined_call_operand.vmem [shape: bf16[128,256], index: 2, kind: input, shape index: {}]   ;;  %s4434_s3 = inlined_call_operand.vmem [shape: f32[1,256], index: 3, kind: input, shape index: {}]   ;;  %s4435_s4 = inlined_call_operand.vmem [shape: bf16[256,512], index: 4, kind: input, shape index: {}]   ;;  %s4436_s5 = inlined_call_operand.vmem [shape: f32[1,512], index: 5, kind: input, shape index: {}]   ;;  %s4437_s6 = inlined_call_operand.vmem [shape: bf16[512,784], index: 6, kind: input, shape index: {}]   ;;  %s4438_s7 = inlined_call_operand.vmem [shape: f32[1,784], index: 7, kind: input, shape index: {}]   ;;  %s4439_s8 = inlined_call_operand.hbm [shape: bf16[8,784], index: 8, kind: output, shape index: {}]  }
   0x1   :  { %v31_v0 = vld [vmem:[%s4431_s0] sm:$0xff]  ;;  %2903 = vset.pattern.permute.xlu0 %v3382_v1  ;;  %184 = vmatprep.mubr.bf16.mxu0 %v3382_v1  ;;  %v2907_v5 = vld [vmem:[%s4433_s2 + $0x14] ss:$8 sps:$4 sm:$0xff]   ;;  %v2909_v6 = vld [vmem:[%s4433_s2 + $0x10] ss:$8 sps:$4 sm:$0xff]  }
   0x2   :  { %v34_v2 = vadd.s32 100, %v31_v0  ;;  %v2904_v3 = vld [vmem:[%s4433_s2 + $0x4] ss:$8 sps:$4 sm:$0xff]   ;;  %v2906_v4 = vld [vmem:[%s4433_s2] ss:$8 sps:$4 sm:$0xff]   ;;  %v33_v48 = vand.u32 127, %v32_v47 }
   0x3   :  { %152 = vmatprep.subr.bf16.mxu0 %v2904_v3  ;;  %v2910_v7 = vld [vmem:[%s4433_s2 + $0x24] ss:$8 sps:$4 sm:$0xff]   ;;  %v2912_v8 = vld [vmem:[%s4433_s2 + $0x20] ss:$8 sps:$4 sm:$0xff]   ;;  %v2913_v9 = vld [vmem:[%s4433_s2 + $0x34] ss:$8 sps:$4 sm:$0xff]  }
   0x4   :  { %36 = vperm.xlu0 %2903, %v34_v2   ;;  %153 = vmatpush1.bf16.msra.mxu0 %v2906_v4  ;;  %v2915_v10 = vld [vmem:[%s4433_s2 + $0x30] ss:$8 sps:$4 sm:$0xff]   ;;  %v2928_v11 = vld [vmem:[%s4435_s4 + $0x4] ss:$16 sps:$4 sm:$0xff]   ;;  %v2918_v15 = vld [vmem:[%s4433_s2 + $0x40] ss:$8 sps:$4 sm:$0xff]  }
   0x5   :  { %154 = vmatprep.subr.bf16.mxu0 %v2907_v5  ;;  %v2916_v12 = vld [vmem:[%s4433_s2 + $0x44] ss:$8 sps:$4 sm:$0xff]   ;;  %v2933_v13 = vld [vmem:[%s4435_s4] ss:$16 sps:$4 sm:$0xff]   ;;  %605 = vmatprep.subr.bf16.mxu1 %v2928_v11  ;;  %v2919_v16 = vld [vmem:[%s4433_s2 + $0x54] ss:$8 sps:$4 sm:$0xff]  }
   0x6   :  { %v2934_v14 = vld [vmem:[%s4435_s4 + $0x24] ss:$16 sps:$4 sm:$0xff]   ;;  %606 = vmatpush1.bf16.msra.mxu1 %v2933_v13  ;;  %v2939_v17 = vld [vmem:[%s4435_s4 + $0x20] ss:$16 sps:$4 sm:$0xff]   ;;  %v2932_v29 = vld [vmem:[%s4435_s4 + $0xc] ss:$16 sps:$4 sm:$0xff]  }
   0x7   :  { %607 = vmatprep.subr.bf16.mxu1 %v2934_v14  ;;  %v2940_v18 = vld [vmem:[%s4435_s4 + $0x44] ss:$16 sps:$4 sm:$0xff]   ;;  %v2921_v19 = vld [vmem:[%s4433_s2 + $0x50] ss:$8 sps:$4 sm:$0xff]   ;;  %v2924_v23 = vld [vmem:[%s4433_s2 + $0x60] ss:$8 sps:$4 sm:$0xff]  }
   0x8   :  { %155 = vmatpush1.bf16.msra.mxu0 %v2909_v6  ;;  %v2945_v20 = vld [vmem:[%s4435_s4 + $0x40] ss:$16 sps:$4 sm:$0xff]   ;;  %v2946_v21 = vld [vmem:[%s4435_s4 + $0x64] ss:$16 sps:$4 sm:$0xff]   ;;  %v2930_v53 = vld [vmem:[%s4435_s4 + $0x8] ss:$16 sps:$4 sm:$0xff]  }
   0x9   :  { %156 = vmatprep.subr.bf16.mxu0 %v2910_v7  ;;  %v2922_v22 = vld [vmem:[%s4433_s2 + $0x64] ss:$8 sps:$4 sm:$0xff]   ;;  %v2951_v24 = vld [vmem:[%s4435_s4 + $0x60] ss:$16 sps:$4 sm:$0xff]   ;;  %v2925_v25 = vld [vmem:[%s4433_s2 + $0x74] ss:$8 sps:$4 sm:$0xff]  }
   0xa   :  { %608 = vmatpush1.bf16.msra.mxu1 %v2939_v17  ;;  %v2952_v26 = vld [vmem:[%s4435_s4 + $0x84] ss:$16 sps:$4 sm:$0xff]   ;;  %v2927_v27 = vld [vmem:[%s4433_s2 + $0x70] ss:$8 sps:$4 sm:$0xff]   ;;  %v42_v49 = vld [vmem:[%s4432_s1] sm:$0xf] }
   0xb   :  { %609 = vmatprep.subr.bf16.mxu1 %v2940_v18  ;;  %v2957_v28 = vld [vmem:[%s4435_s4 + $0x80] ss:$16 sps:$4 sm:$0xff]   ;;  %v2958_v30 = vld [vmem:[%s4435_s4 + $0xa4] ss:$16 sps:$4 sm:$0xff]   ;;  %v2938_v55 = vld [vmem:[%s4435_s4 + $0x2c] ss:$16 sps:$4 sm:$0xff]  }
   0xc   :  { %157 = vmatpush1.bf16.msra.mxu0 %v2912_v8  ;;  %v2963_v31 = vld [vmem:[%s4435_s4 + $0xa0] ss:$16 sps:$4 sm:$0xff]   ;;  %v2964_v32 = vld [vmem:[%s4435_s4 + $0xc4] ss:$16 sps:$4 sm:$0xff]  }
   0xd   :  { %158 = vmatprep.subr.bf16.mxu0 %v2913_v9  ;;  %v2969_v33 = vld [vmem:[%s4435_s4 + $0xc0] ss:$16 sps:$4 sm:$0xff]   ;;  %v2970_v34 = vld [vmem:[%s4435_s4 + $0xe4] ss:$16 sps:$4 sm:$0xff]  }
   0xe   :  { %610 = vmatpush1.bf16.msra.mxu1 %v2945_v20  ;;  %v2975_v35 = vld [vmem:[%s4435_s4 + $0xe0] ss:$16 sps:$4 sm:$0xff]   ;;  %v2976_v36 = vld [vmem:[%s4435_s4 + $0x104] ss:$16 sps:$4 sm:$0xff]  }
   0xf   :  { %611 = vmatprep.subr.bf16.mxu1 %v2946_v21  ;;  %v2981_v37 = vld [vmem:[%s4435_s4 + $0x100] ss:$16 sps:$4 sm:$0xff]   ;;  %v2982_v38 = vld [vmem:[%s4435_s4 + $0x124] ss:$16 sps:$4 sm:$0xff]  }
  0x10   :  { %159 = vmatpush1.bf16.msra.mxu0 %v2915_v10  ;;  %v2987_v39 = vld [vmem:[%s4435_s4 + $0x120] ss:$16 sps:$4 sm:$0xff]   ;;  %v2988_v40 = vld [vmem:[%s4435_s4 + $0x144] ss:$16 sps:$4 sm:$0xff]  }
  0x11   :  { %160 = vmatprep.subr.bf16.mxu0 %v2916_v12  ;;  %v2993_v41 = vld [vmem:[%s4435_s4 + $0x140] ss:$16 sps:$4 sm:$0xff]   ;;  %v2994_v42 = vld [vmem:[%s4435_s4 + $0x164] ss:$16 sps:$4 sm:$0xff]  }
  0x12   :  { %612 = vmatpush1.bf16.msra.mxu1 %v2951_v24  ;;  %v2999_v43 = vld [vmem:[%s4435_s4 + $0x160] ss:$16 sps:$4 sm:$0xff]   ;;  %v3000_v44 = vld [vmem:[%s4435_s4 + $0x184] ss:$16 sps:$4 sm:$0xff]  }
  0x13   :  { %613 = vmatprep.subr.bf16.mxu1 %v2952_v26  ;;  %v3005_v45 = vld [vmem:[%s4435_s4 + $0x180] ss:$16 sps:$4 sm:$0xff]   ;;  %v3006_v46 = vld [vmem:[%s4435_s4 + $0x1a4] ss:$16 sps:$4 sm:$0xff]  }
  0x14   :  { %161 = vmatpush1.bf16.msra.mxu0 %v2918_v15 }
  0x15   :  { %162 = vmatprep.subr.bf16.mxu0 %v2919_v16 }
  0x16   :  { %614 = vmatpush1.bf16.msra.mxu1 %v2957_v28 }
  0x17   :  { %615 = vmatprep.subr.bf16.mxu1 %v2958_v30 }
  0x18   :  { %163 = vmatpush1.bf16.msra.mxu0 %v2921_v19 }
  0x19   :  { %164 = vmatprep.subr.bf16.mxu0 %v2922_v22 }
  0x1a   :  { %616 = vmatpush1.bf16.msra.mxu1 %v2963_v31 }
  0x1b   :  { %617 = vmatprep.subr.bf16.mxu1 %v2964_v32 }
  0x1c   :  { %165 = vmatpush1.bf16.msra.mxu0 %v2924_v23 }
  0x1d   :  { %166 = vmatprep.subr.bf16.mxu0 %v2925_v25 }
  0x1e   :  { %618 = vmatpush1.bf16.msra.mxu1 %v2969_v33 }
  0x1f   :  { %619 = vmatprep.subr.bf16.mxu1 %v2970_v34 }
  0x20   :  { %167 = vmatpush1.bf16.msra.mxu0 %v2927_v27 }
  0x21   :  { %646 = vmatprep.subr.bf16.mxu0 %v2932_v29 }
  0x22   :  { %620 = vmatpush1.bf16.msra.mxu1 %v2975_v35 }
  0x23   :  { %621 = vmatprep.subr.bf16.mxu1 %v2976_v36 }
  0x26   :  { %622 = vmatpush1.bf16.msra.mxu1 %v2981_v37 }
  0x27   :  { %623 = vmatprep.subr.bf16.mxu1 %v2982_v38 }
  0x2a   :  { %624 = vmatpush1.bf16.msra.mxu1 %v2987_v39 }
  0x2b   :  { %625 = vmatprep.subr.bf16.mxu1 %v2988_v40 }
  0x2e   :  { %626 = vmatpush1.bf16.msra.mxu1 %v2993_v41 }
  0x2f   :  { %627 = vmatprep.subr.bf16.mxu1 %v2994_v42 }
  0x32   :  { %628 = vmatpush1.bf16.msra.mxu1 %v2999_v43 }
  0x33   :  { %629 = vmatprep.subr.bf16.mxu1 %v3000_v44 }
  0x36   :  { %630 = vmatpush1.bf16.msra.mxu1 %v3005_v45 }
  0x37   :  { %631 = vmatprep.subr.bf16.mxu1 %v3006_v46 }
  0x83   :  { %v37_v50 = vpop.permute.xlu0 %36 }
  0x84   :  { %vm38_vm0 = vcmp.eq.s32.totalorder %v33_v48, %v37_v50 }
  0x85   :  { %v2525_v52 = vsel %vm38_vm0, 1.0, %v3383_v51 }
  0x86   :  { %v41_v54 = vpack.c.bf16 %v2525_v52, %v2525_v52 }
  0x88   :  { %v43_v56 = vadd.bf16 %v42_v49, %v41_v54 }
  0x89   :  { %13 = vsyncpa [#allocation3], 0  ;;  %v2936_v57 = vld [vmem:[%s4435_s4 + $0x28] ss:$16 sps:$4 sm:$0xff]   ;;  %v2944_v58 = vld [vmem:[%s4435_s4 + $0x4c] ss:$16 sps:$4 sm:$0xff]  }
  0x8a   :  { %185 = vmatmul.mubr.bf16.vlgmr.msra.gmra.mrb[0].mxu0 %v43_v56  ;;  %v2942_v59 = vld [vmem:[%s4435_s4 + $0x48] ss:$16 sps:$4 sm:$0xff]   ;;  %v2950_v60 = vld [vmem:[%s4435_s4 + $0x6c] ss:$16 sps:$4 sm:$0xff]   ;;  %v3011_v18 = vld [vmem:[%s4435_s4 + $0x1a0] ss:$16 sps:$4 sm:$0xff]  }
  0x8b   :  { %647 = vmatpush1.bf16.msra.mxu0 %v2930_v53  ;;  %v2948_v61 = vld [vmem:[%s4435_s4 + $0x68] ss:$16 sps:$4 sm:$0xff]   ;;  %v2956_v62 = vld [vmem:[%s4435_s4 + $0x8c] ss:$16 sps:$4 sm:$0xff]   ;;  %632 = vmatpush1.bf16.msra.mxu1 %v3011_v18  ;;  %v3012_v19 = vld [vmem:[%s4435_s4 + $0x1c4] ss:$16 sps:$4 sm:$0xff]  }
  0x8c   :  { %648 = vmatprep.subr.bf16.mxu0 %v2938_v55  ;;  %v2954_v63 = vld [vmem:[%s4435_s4 + $0x88] ss:$16 sps:$4 sm:$0xff]   ;;  %v2962_v0 = vld [vmem:[%s4435_s4 + $0xac] ss:$16 sps:$4 sm:$0xff]   ;;  %v3017_v22 = vld [vmem:[%s4435_s4 + $0x1c0] ss:$16 sps:$4 sm:$0xff]   ;;  %633 = vmatprep.subr.bf16.mxu1 %v3012_v19 }
  0x8d   :  { %v2960_v1 = vld [vmem:[%s4435_s4 + $0xa8] ss:$16 sps:$4 sm:$0xff]   ;;  %v2968_v2 = vld [vmem:[%s4435_s4 + $0xcc] ss:$16 sps:$4 sm:$0xff]   ;;  %v3018_v23 = vld [vmem:[%s4435_s4 + $0x1e4] ss:$16 sps:$4 sm:$0xff]  }
  0x8e   :  { %v2966_v3 = vld [vmem:[%s4435_s4 + $0xc8] ss:$16 sps:$4 sm:$0xff]   ;;  %v2974_v4 = vld [vmem:[%s4435_s4 + $0xec] ss:$16 sps:$4 sm:$0xff]   ;;  %v3023_v26 = vld [vmem:[%s4435_s4 + $0x1e0] ss:$16 sps:$4 sm:$0xff]  }
  0x8f   :  { %649 = vmatpush1.bf16.msra.mxu0 %v2936_v57  ;;  %v2972_v5 = vld [vmem:[%s4435_s4 + $0xe8] ss:$16 sps:$4 sm:$0xff]   ;;  %v2980_v6 = vld [vmem:[%s4435_s4 + $0x10c] ss:$16 sps:$4 sm:$0xff]   ;;  %634 = vmatpush1.bf16.msra.mxu1 %v3017_v22  ;;  %v3026_v27 = vld [vmem:[%s4437_s6 + $0x4] ss:$28 sps:$4 sm:$0xff]  }
  0x90   :  { %650 = vmatprep.subr.bf16.mxu0 %v2944_v58  ;;  %v2978_v7 = vld [vmem:[%s4435_s4 + $0x108] ss:$16 sps:$4 sm:$0xff]   ;;  %v2986_v8 = vld [vmem:[%s4435_s4 + $0x12c] ss:$16 sps:$4 sm:$0xff]   ;;  %635 = vmatprep.subr.bf16.mxu1 %v3018_v23  ;;  %v3684_v29 = vshrl.u32 %v32_v47, 7  ;;  %vm2509_vm1 = vcmask 125952  }
  0x91   :  { %v2984_v9 = vld [vmem:[%s4435_s4 + $0x128] ss:$16 sps:$4 sm:$0xff]   ;;  %v2992_v10 = vld [vmem:[%s4435_s4 + $0x14c] ss:$16 sps:$4 sm:$0xff]   ;;  %v60_v31 = vld [vmem:[%s4434_s3] sm:$0x3] }
  0x92   :  { %v2990_v11 = vld [vmem:[%s4435_s4 + $0x148] ss:$16 sps:$4 sm:$0xff]   ;;  %v2998_v12 = vld [vmem:[%s4435_s4 + $0x16c] ss:$16 sps:$4 sm:$0xff]   ;;  %v3687_v30 = vsub.s32 0, %v3684_v29  ;;  %v3693_v32 = vsub.s32 1, %v3684_v29 }
  0x93   :  { %651 = vmatpush1.bf16.msra.mxu0 %v2942_v59  ;;  %v2996_v13 = vld [vmem:[%s4435_s4 + $0x168] ss:$16 sps:$4 sm:$0xff]   ;;  %v3004_v14 = vld [vmem:[%s4435_s4 + $0x18c] ss:$16 sps:$4 sm:$0xff]   ;;  %636 = vmatpush1.bf16.msra.mxu1 %v3023_v26  ;;  %v3035_v50 = vld [vmem:[%s4437_s6 + $0x44] ss:$28 sps:$4 sm:$0xff]  }
  0x94   :  { %652 = vmatprep.subr.bf16.mxu0 %v2950_v60  ;;  %v3002_v15 = vld [vmem:[%s4435_s4 + $0x188] ss:$16 sps:$4 sm:$0xff]   ;;  %v3010_v16 = vld [vmem:[%s4435_s4 + $0x1ac] ss:$16 sps:$4 sm:$0xff]   ;;  %2144 = vmatprep.subr.bf16.mxu1 %v3026_v27  ;;  %v65_v33 = vrot.slane %v60_v31, %v3687_v30  ;;  %v69_v34 = vrot.slane %v60_v31, %v3693_v32  ;;  %v3038_v53 = vld [vmem:[%s4437_s6 + $0x74] ss:$28 sps:$4 sm:$0xff]  }
  0x95   :  { %v3008_v17 = vld [vmem:[%s4435_s4 + $0x1a8] ss:$16 sps:$4 sm:$0xff]   ;;  %v3016_v20 = vld [vmem:[%s4435_s4 + $0x1cc] ss:$16 sps:$4 sm:$0xff]   ;;  %v3047_v58 = vld [vmem:[%s4437_s6 + $0xb4] ss:$28 sps:$4 sm:$0xff]  }
  0x96   :  { %v3014_v21 = vld [vmem:[%s4435_s4 + $0x1c8] ss:$16 sps:$4 sm:$0xff]   ;;  %v3022_v24 = vld [vmem:[%s4435_s4 + $0x1ec] ss:$16 sps:$4 sm:$0xff]   ;;  %v3083_v18 = vld [vmem:[%s4437_s6 + $0x204] ss:$28 sps:$4 sm:$0xff]  }
  0x97   :  { %653 = vmatpush1.bf16.msra.mxu0 %v2948_v61  ;;  %v3020_v25 = vld [vmem:[%s4435_s4 + $0x1e8] ss:$16 sps:$4 sm:$0xff]   ;;  %v3024_v46 = vld [vmem:[%s4437_s6] ss:$28 sps:$4 sm:$0xff]   ;;  %v3036_v55 = vld [vmem:[%s4437_s6 + $0x70] ss:$28 sps:$4 sm:$0xff]  }
  0x98   :  { %654 = vmatprep.subr.bf16.mxu0 %v2956_v62  ;;  %v3029_v28 = vld [vmem:[%s4437_s6 + $0xc] ss:$28 sps:$4 sm:$0xff]   ;;  %v3032_v49 = vld [vmem:[%s4437_s6 + $0x3c] ss:$28 sps:$4 sm:$0xff]   ;;  %v3050_v61 = vld [vmem:[%s4437_s6 + $0xe4] ss:$28 sps:$4 sm:$0xff]  }
  0x99   :  { %v3027_v47 = vld [vmem:[%s4437_s6 + $0x8] ss:$28 sps:$4 sm:$0xff]   ;;  %v3030_v51 = vld [vmem:[%s4437_s6 + $0x38] ss:$28 sps:$4 sm:$0xff]   ;;  %v3033_v52 = vld [vmem:[%s4437_s6 + $0x40] ss:$28 sps:$4 sm:$0xff]  }
  0x9a   :  { %v3041_v54 = vld [vmem:[%s4437_s6 + $0x7c] ss:$28 sps:$4 sm:$0xff]   ;;  %v3044_v57 = vld [vmem:[%s4437_s6 + $0xac] ss:$28 sps:$4 sm:$0xff]   ;;  %v3095_v26 = vld [vmem:[%s4437_s6 + $0x274] ss:$28 sps:$4 sm:$0xff]  }
  0x9b   :  { %655 = vmatpush1.bf16.msra.mxu0 %v2954_v63  ;;  %v3039_v56 = vld [vmem:[%s4437_s6 + $0x78] ss:$28 sps:$4 sm:$0xff]   ;;  %v3042_v59 = vld [vmem:[%s4437_s6 + $0xa8] ss:$28 sps:$4 sm:$0xff]   ;;  %v3045_v60 = vld [vmem:[%s4437_s6 + $0xb0] ss:$28 sps:$4 sm:$0xff]  }
  0x9c   :  { %656 = vmatprep.subr.bf16.mxu0 %v2962_v0  ;;  %v3053_v62 = vld [vmem:[%s4437_s6 + $0xec] ss:$28 sps:$4 sm:$0xff]   ;;  %v3048_v63 = vld [vmem:[%s4437_s6 + $0xe0] ss:$28 sps:$4 sm:$0xff]   ;;  %v3078_v19 = vld [vmem:[%s4437_s6 + $0x1f8] ss:$28 sps:$4 sm:$0xff]  }
  0x9d   :  { %v3051_v0 = vld [vmem:[%s4437_s6 + $0xe8] ss:$28 sps:$4 sm:$0xff]   ;;  %v3089_v22 = vld [vmem:[%s4437_s6 + $0x23c] ss:$28 sps:$4 sm:$0xff]   ;;  %v3084_v23 = vld [vmem:[%s4437_s6 + $0x230] ss:$28 sps:$4 sm:$0xff]  }
  0x9e   :  { %v3090_v27 = vld [vmem:[%s4437_s6 + $0x268] ss:$28 sps:$4 sm:$0xff]  }
  0x9f   :  { %657 = vmatpush1.bf16.msra.mxu0 %v2960_v1  ;;  %v3056_v1 = vld [vmem:[%s4437_s6 + $0x11c] ss:$28 sps:$4 sm:$0xff]   ;;  %v3098_v31 = vld [vmem:[%s4437_s6 + $0x2a4] ss:$28 sps:$4 sm:$0xff]  }
  0xa0   :  { %658 = vmatprep.subr.bf16.mxu0 %v2968_v2  ;;  %v3059_v2 = vld [vmem:[%s4437_s6 + $0x124] ss:$28 sps:$4 sm:$0xff]  }
  0xa3   :  { %659 = vmatpush1.bf16.msra.mxu0 %v2966_v3  ;;  %v3054_v3 = vld [vmem:[%s4437_s6 + $0x118] ss:$28 sps:$4 sm:$0xff]  }
  0xa4   :  { %660 = vmatprep.subr.bf16.mxu0 %v2974_v4  ;;  %v3057_v4 = vld [vmem:[%s4437_s6 + $0x120] ss:$28 sps:$4 sm:$0xff]  }
  0xa7   :  { %661 = vmatpush1.bf16.msra.mxu0 %v2972_v5  ;;  %v3062_v5 = vld [vmem:[%s4437_s6 + $0x154] ss:$28 sps:$4 sm:$0xff]  }
  0xa8   :  { %662 = vmatprep.subr.bf16.mxu0 %v2980_v6  ;;  %v3065_v6 = vld [vmem:[%s4437_s6 + $0x15c] ss:$28 sps:$4 sm:$0xff]  }
  0xab   :  { %663 = vmatpush1.bf16.msra.mxu0 %v2978_v7  ;;  %v3060_v7 = vld [vmem:[%s4437_s6 + $0x150] ss:$28 sps:$4 sm:$0xff]  }
  0xac   :  { %664 = vmatprep.subr.bf16.mxu0 %v2986_v8  ;;  %v3063_v8 = vld [vmem:[%s4437_s6 + $0x158] ss:$28 sps:$4 sm:$0xff]  }
  0xaf   :  { %665 = vmatpush1.bf16.msra.mxu0 %v2984_v9  ;;  %v3068_v9 = vld [vmem:[%s4437_s6 + $0x18c] ss:$28 sps:$4 sm:$0xff]  }
  0xb0   :  { %666 = vmatprep.subr.bf16.mxu0 %v2992_v10  ;;  %v3071_v10 = vld [vmem:[%s4437_s6 + $0x194] ss:$28 sps:$4 sm:$0xff]  }
  0xb3   :  { %667 = vmatpush1.bf16.msra.mxu0 %v2990_v11  ;;  %v3066_v11 = vld [vmem:[%s4437_s6 + $0x188] ss:$28 sps:$4 sm:$0xff]  }
  0xb4   :  { %668 = vmatprep.subr.bf16.mxu0 %v2998_v12  ;;  %v3069_v12 = vld [vmem:[%s4437_s6 + $0x190] ss:$28 sps:$4 sm:$0xff]  }
  0xb7   :  { %669 = vmatpush1.bf16.msra.mxu0 %v2996_v13  ;;  %v3074_v13 = vld [vmem:[%s4437_s6 + $0x1c4] ss:$28 sps:$4 sm:$0xff]  }
  0xb8   :  { %670 = vmatprep.subr.bf16.mxu0 %v3004_v14  ;;  %v3077_v14 = vld [vmem:[%s4437_s6 + $0x1cc] ss:$28 sps:$4 sm:$0xff]  }
  0xbb   :  { %671 = vmatpush1.bf16.msra.mxu0 %v3002_v15  ;;  %v3072_v15 = vld [vmem:[%s4437_s6 + $0x1c0] ss:$28 sps:$4 sm:$0xff]  }
  0xbc   :  { %672 = vmatprep.subr.bf16.mxu0 %v3010_v16  ;;  %v3075_v16 = vld [vmem:[%s4437_s6 + $0x1c8] ss:$28 sps:$4 sm:$0xff]  }
  0xbf   :  { %673 = vmatpush1.bf16.msra.mxu0 %v3008_v17  ;;  %v3080_v17 = vld [vmem:[%s4437_s6 + $0x1fc] ss:$28 sps:$4 sm:$0xff]  }
  0xc0   :  { %674 = vmatprep.subr.bf16.mxu0 %v3016_v20  ;;  %v3081_v20 = vld [vmem:[%s4437_s6 + $0x200] ss:$28 sps:$4 sm:$0xff]  }
  0xc3   :  { %675 = vmatpush1.bf16.msra.mxu0 %v3014_v21  ;;  %v3086_v21 = vld [vmem:[%s4437_s6 + $0x234] ss:$28 sps:$4 sm:$0xff]  }
  0xc4   :  { %676 = vmatprep.subr.bf16.mxu0 %v3022_v24  ;;  %v3087_v24 = vld [vmem:[%s4437_s6 + $0x238] ss:$28 sps:$4 sm:$0xff]  }
  0xc7   :  { %677 = vmatpush1.bf16.msra.mxu0 %v3020_v25  ;;  %v3092_v25 = vld [vmem:[%s4437_s6 + $0x26c] ss:$28 sps:$4 sm:$0xff]  }
  0xc8   :  { %2226 = vmatprep.subr.bf16.mxu0 %v3029_v28  ;;  %v3093_v28 = vld [vmem:[%s4437_s6 + $0x270] ss:$28 sps:$4 sm:$0xff]  }
 0x15d   :  { %v186_v35 = vpop.f32.mrb[0].mxu0 }
 0x15e   :  { %v187_v36 = vadd.f32 %v186_v35, %v65_v33  ;;  %v188_v37 = vpop.f32.mrb[1].mxu0  ;;  %v3101_v33 = vld [vmem:[%s4437_s6 + $0x2ac] ss:$28 sps:$4 sm:$0xff]  }
 0x15f   :  { %v189_v38 = vadd.f32 %v188_v37, %v69_v34  ;;  %v190_v39 = vpop.f32.mrb[2].mxu0  ;;  %v3096_v34 = vld [vmem:[%s4437_s6 + $0x2a0] ss:$28 sps:$4 sm:$0xff]   ;;  %v3099_v35 = vld [vmem:[%s4437_s6 + $0x2a8] ss:$28 sps:$4 sm:$0xff]  }
 0x160   :  { %v193_v40 = vmul.f32 0.2, %v187_v36  ;;  %v191_v41 = vpop.f32.mrb[3].mxu0  ;;  %v3107_v37 = vld [vmem:[%s4437_s6 + $0x2e4] ss:$28 sps:$4 sm:$0xff]  }
 0x161   :  { %v194_v42 = vmul.f32 0.2, %v189_v38  ;;  %v3105_v39 = vld [vmem:[%s4437_s6 + $0x2e0] ss:$28 sps:$4 sm:$0xff]  }
 0x162   :  { %v195_v43 = vmax.f32 %v187_v36, %v193_v40  ;;  %v3104_v36 = vld [vmem:[%s4437_s6 + $0x2dc] ss:$28 sps:$4 sm:$0xff]   ;;  %v3110_v40 = vld [vmem:[%s4437_s6 + $0x314] ss:$28 sps:$4 sm:$0xff]  }
 0x163   :  { %v196_v44 = vmax.f32 %v189_v38, %v194_v42  ;;  %v3102_v38 = vld [vmem:[%s4437_s6 + $0x2d8] ss:$28 sps:$4 sm:$0xff]   ;;  %v3108_v42 = vld [vmem:[%s4437_s6 + $0x310] ss:$28 sps:$4 sm:$0xff]  }
 0x164   :  { %v197_v48 = vpack.c.bf16 %v195_v43, %v195_v43  ;;  %v3113_v41 = vld [vmem:[%s4437_s6 + $0x31c] ss:$28 sps:$4 sm:$0xff]  }
 0x165   :  { %v198_v45 = vpack.c.bf16 %v196_v44, %v196_v44  ;;  %v3111_v43 = vld [vmem:[%s4437_s6 + $0x318] ss:$28 sps:$4 sm:$0xff]   ;;  %v3116_v44 = vld [vmem:[%s4437_s6 + $0x34c] ss:$28 sps:$4 sm:$0xff]  }
 0x167   :  { %637 = vmatprep.mubr.bf16.mxu1 %v198_v45  ;;  %678 = vmatprep.mubr.bf16.mxu0 %v198_v45  ;;  %v3119_v45 = vld [vmem:[%s4437_s6 + $0x354] ss:$28 sps:$4 sm:$0xff]  }
 0x168   :  { %638 = vmatmul.mubr.bf16.vlgmr.msra.gmra.mrb[0].mxu1 %v197_v48  ;;  %679 = vmatmul.mubr.bf16.vlgmr.msra.gmra.mrb[4].mxu0 %v197_v48  ;;  %v3122_v48 = vld [vmem:[%s4437_s6 + $0x384] ss:$28 sps:$4 sm:$0xff]  }
 0x169   :  { %2145 = vmatpush1.bf16.msra.mxu1 %v3024_v46  ;;  %2227 = vmatpush1.bf16.msra.mxu0 %v3027_v47  ;;  %v3114_v46 = vld [vmem:[%s4437_s6 + $0x348] ss:$28 sps:$4 sm:$0xff]   ;;  %v3117_v47 = vld [vmem:[%s4437_s6 + $0x350] ss:$28 sps:$4 sm:$0xff]  }
 0x16a   :  { %2146 = vmatprep.subr.bf16.mxu1 %v3032_v49  ;;  %2228 = vmatprep.subr.bf16.mxu0 %v3035_v50  ;;  %v3125_v49 = vld [vmem:[%s4437_s6 + $0x38c] ss:$28 sps:$4 sm:$0xff]   ;;  %v3892_v50 = vld [vmem:[%s4436_s5] sm:$0xf] }
 0x16d   :  { %2147 = vmatpush1.bf16.msra.mxu1 %v3030_v51  ;;  %2229 = vmatpush1.bf16.msra.mxu0 %v3033_v52  ;;  %v279_v51 = vsub.s32 3, %v3684_v29  ;;  %v268_v52 = vrot.slane %v3892_v50, %v3687_v30 }
 0x16e   :  { %2148 = vmatprep.subr.bf16.mxu1 %v3038_v53  ;;  %2230 = vmatprep.subr.bf16.mxu0 %v3041_v54  ;;  %v272_v53 = vrot.slane %v3892_v50, %v3693_v32 }
 0x16f   :  { %v280_v54 = vrot.slane %v3892_v50, %v279_v51 }
 0x171   :  { %2149 = vmatpush1.bf16.msra.mxu1 %v3036_v55  ;;  %2231 = vmatpush1.bf16.msra.mxu0 %v3039_v56 }
 0x172   :  { %2150 = vmatprep.subr.bf16.mxu1 %v3044_v57  ;;  %2232 = vmatprep.subr.bf16.mxu0 %v3047_v58 }
 0x175   :  { %2151 = vmatpush1.bf16.msra.mxu1 %v3042_v59  ;;  %2233 = vmatpush1.bf16.msra.mxu0 %v3045_v60 }
 0x176   :  { %2152 = vmatprep.subr.bf16.mxu1 %v3050_v61  ;;  %2234 = vmatprep.subr.bf16.mxu0 %v3053_v62 }
 0x179   :  { %2153 = vmatpush1.bf16.msra.mxu1 %v3048_v63  ;;  %2235 = vmatpush1.bf16.msra.mxu0 %v3051_v0 }
 0x17a   :  { %2154 = vmatprep.subr.bf16.mxu1 %v3056_v1  ;;  %2236 = vmatprep.subr.bf16.mxu0 %v3059_v2 }
 0x17d   :  { %2155 = vmatpush1.bf16.msra.mxu1 %v3054_v3  ;;  %2237 = vmatpush1.bf16.msra.mxu0 %v3057_v4 }
 0x17e   :  { %2156 = vmatprep.subr.bf16.mxu1 %v3062_v5  ;;  %2238 = vmatprep.subr.bf16.mxu0 %v3065_v6 }
 0x181   :  { %2157 = vmatpush1.bf16.msra.mxu1 %v3060_v7  ;;  %2239 = vmatpush1.bf16.msra.mxu0 %v3063_v8 }
 0x182   :  { %2158 = vmatprep.subr.bf16.mxu1 %v3068_v9  ;;  %2240 = vmatprep.subr.bf16.mxu0 %v3071_v10  ;;  %v3120_v9 = vld [vmem:[%s4437_s6 + $0x380] ss:$28 sps:$4 sm:$0xff]   ;;  %v3123_v10 = vld [vmem:[%s4437_s6 + $0x388] ss:$28 sps:$4 sm:$0xff]  }
 0x185   :  { %2159 = vmatpush1.bf16.msra.mxu1 %v3066_v11  ;;  %2241 = vmatpush1.bf16.msra.mxu0 %v3069_v12  ;;  %v3128_v12 = vld [vmem:[%s4437_s6 + $0x3bc] ss:$28 sps:$4 sm:$0xff]  }
 0x186   :  { %2160 = vmatprep.subr.bf16.mxu1 %v3074_v13  ;;  %2242 = vmatprep.subr.bf16.mxu0 %v3077_v14  ;;  %v3131_v13 = vld [vmem:[%s4437_s6 + $0x3c4] ss:$28 sps:$4 sm:$0xff]  }
 0x189   :  { %2161 = vmatpush1.bf16.msra.mxu1 %v3072_v15  ;;  %2243 = vmatpush1.bf16.msra.mxu0 %v3075_v16  ;;  %v3126_v15 = vld [vmem:[%s4437_s6 + $0x3b8] ss:$28 sps:$4 sm:$0xff]   ;;  %v3129_v16 = vld [vmem:[%s4437_s6 + $0x3c0] ss:$28 sps:$4 sm:$0xff]  }
 0x18a   :  { %2162 = vmatprep.subr.bf16.mxu1 %v3080_v17  ;;  %2244 = vmatprep.subr.bf16.mxu0 %v3083_v18  ;;  %v3134_v17 = vld [vmem:[%s4437_s6 + $0x3f4] ss:$28 sps:$4 sm:$0xff]   ;;  %v3137_v18 = vld [vmem:[%s4437_s6 + $0x3fc] ss:$28 sps:$4 sm:$0xff]  }
 0x18d   :  { %2163 = vmatpush1.bf16.msra.mxu1 %v3078_v19  ;;  %2245 = vmatpush1.bf16.msra.mxu0 %v3081_v20  ;;  %v3132_v19 = vld [vmem:[%s4437_s6 + $0x3f0] ss:$28 sps:$4 sm:$0xff]   ;;  %v3135_v20 = vld [vmem:[%s4437_s6 + $0x3f8] ss:$28 sps:$4 sm:$0xff]  }
 0x18e   :  { %2164 = vmatprep.subr.bf16.mxu1 %v3086_v21  ;;  %2246 = vmatprep.subr.bf16.mxu0 %v3089_v22  ;;  %v3140_v21 = vld [vmem:[%s4437_s6 + $0x42c] ss:$28 sps:$4 sm:$0xff]   ;;  %v3143_v22 = vld [vmem:[%s4437_s6 + $0x434] ss:$28 sps:$4 sm:$0xff]  }
 0x191   :  { %2165 = vmatpush1.bf16.msra.mxu1 %v3084_v23  ;;  %2247 = vmatpush1.bf16.msra.mxu0 %v3087_v24  ;;  %v3138_v23 = vld [vmem:[%s4437_s6 + $0x428] ss:$28 sps:$4 sm:$0xff]   ;;  %v3141_v24 = vld [vmem:[%s4437_s6 + $0x430] ss:$28 sps:$4 sm:$0xff]  }
 0x192   :  { %2166 = vmatprep.subr.bf16.mxu1 %v3092_v25  ;;  %2248 = vmatprep.subr.bf16.mxu0 %v3095_v26  ;;  %v3146_v25 = vld [vmem:[%s4437_s6 + $0x464] ss:$28 sps:$4 sm:$0xff]   ;;  %v3149_v26 = vld [vmem:[%s4437_s6 + $0x46c] ss:$28 sps:$4 sm:$0xff]  }
 0x195   :  { %2167 = vmatpush1.bf16.msra.mxu1 %v3090_v27  ;;  %2249 = vmatpush1.bf16.msra.mxu0 %v3093_v28  ;;  %v3144_v27 = vld [vmem:[%s4437_s6 + $0x460] ss:$28 sps:$4 sm:$0xff]   ;;  %v3147_v28 = vld [vmem:[%s4437_s6 + $0x468] ss:$28 sps:$4 sm:$0xff]  }
 0x196   :  { %2168 = vmatprep.subr.bf16.mxu1 %v3098_v31  ;;  %2250 = vmatprep.subr.bf16.mxu0 %v3101_v33  ;;  %v3152_v31 = vld [vmem:[%s4437_s6 + $0x49c] ss:$28 sps:$4 sm:$0xff]   ;;  %v3155_v33 = vld [vmem:[%s4437_s6 + $0x4a4] ss:$28 sps:$4 sm:$0xff]  }
 0x199   :  { %2169 = vmatpush1.bf16.msra.mxu1 %v3096_v34  ;;  %2251 = vmatpush1.bf16.msra.mxu0 %v3099_v35  ;;  %v3150_v34 = vld [vmem:[%s4437_s6 + $0x498] ss:$28 sps:$4 sm:$0xff]   ;;  %v3153_v35 = vld [vmem:[%s4437_s6 + $0x4a0] ss:$28 sps:$4 sm:$0xff]  }
 0x19a   :  { %2170 = vmatprep.subr.bf16.mxu1 %v3104_v36  ;;  %2252 = vmatprep.subr.bf16.mxu0 %v3107_v37  ;;  %v3158_v36 = vld [vmem:[%s4437_s6 + $0x4d4] ss:$28 sps:$4 sm:$0xff]   ;;  %v3161_v37 = vld [vmem:[%s4437_s6 + $0x4dc] ss:$28 sps:$4 sm:$0xff]  }
 0x19d   :  { %2171 = vmatpush1.bf16.msra.mxu1 %v3102_v38  ;;  %2253 = vmatpush1.bf16.msra.mxu0 %v3105_v39  ;;  %v3156_v38 = vld [vmem:[%s4437_s6 + $0x4d0] ss:$28 sps:$4 sm:$0xff]   ;;  %v3159_v39 = vld [vmem:[%s4437_s6 + $0x4d8] ss:$28 sps:$4 sm:$0xff]  }
 0x19e   :  { %2172 = vmatprep.subr.bf16.mxu1 %v3110_v40  ;;  %2254 = vmatprep.subr.bf16.mxu0 %v3113_v41  ;;  %v3164_v40 = vld [vmem:[%s4437_s6 + $0x50c] ss:$28 sps:$4 sm:$0xff]   ;;  %v3167_v41 = vld [vmem:[%s4437_s6 + $0x514] ss:$28 sps:$4 sm:$0xff]  }
 0x1a1   :  { %2173 = vmatpush1.bf16.msra.mxu1 %v3108_v42  ;;  %2255 = vmatpush1.bf16.msra.mxu0 %v3111_v43  ;;  %v3162_v42 = vld [vmem:[%s4437_s6 + $0x508] ss:$28 sps:$4 sm:$0xff]   ;;  %v3165_v43 = vld [vmem:[%s4437_s6 + $0x510] ss:$28 sps:$4 sm:$0xff]  }
 0x1a2   :  { %2174 = vmatprep.subr.bf16.mxu1 %v3116_v44  ;;  %2256 = vmatprep.subr.bf16.mxu0 %v3119_v45  ;;  %v3170_v44 = vld [vmem:[%s4437_s6 + $0x544] ss:$28 sps:$4 sm:$0xff]   ;;  %v3173_v45 = vld [vmem:[%s4437_s6 + $0x54c] ss:$28 sps:$4 sm:$0xff]  }
 0x1a5   :  { %2175 = vmatpush1.bf16.msra.mxu1 %v3114_v46  ;;  %2257 = vmatpush1.bf16.msra.mxu0 %v3117_v47  ;;  %v3168_v46 = vld [vmem:[%s4437_s6 + $0x540] ss:$28 sps:$4 sm:$0xff]   ;;  %v3171_v47 = vld [vmem:[%s4437_s6 + $0x548] ss:$28 sps:$4 sm:$0xff]  }
 0x1a6   :  { %2185 = vmatprep.subr.bf16.mxu1 %v3122_v48  ;;  %2267 = vmatprep.subr.bf16.mxu0 %v3125_v49  ;;  %v3176_v48 = vld [vmem:[%s4437_s6 + $0x57c] ss:$28 sps:$4 sm:$0xff]   ;;  %v3179_v49 = vld [vmem:[%s4437_s6 + $0x584] ss:$28 sps:$4 sm:$0xff]  }
 0x23b   :  { %v639_v55 = vpop.f32.mrb[0].mxu1  ;;  %v3902_v56 = vpop.f32.mrb[4].mxu0 }
 0x23c   :  { %v640_v57 = vadd.f32 %v639_v55, %v268_v52  ;;  %v641_v58 = vpop.f32.mrb[1].mxu1  ;;  %v682_v59 = vpop.f32.mrb[5].mxu0  ;;  %v3174_v52 = vld [vmem:[%s4437_s6 + $0x578] ss:$28 sps:$4 sm:$0xff]  }
 0x23d   :  { %v642_v60 = vadd.f32 %v641_v58, %v272_v53  ;;  %v683_v61 = vadd.f32 %v682_v59, %v280_v54  ;;  %v643_v62 = vpop.f32.mrb[2].mxu1  ;;  %v684_v63 = vpop.f32.mrb[6].mxu0  ;;  %v3177_v53 = vld [vmem:[%s4437_s6 + $0x580] ss:$28 sps:$4 sm:$0xff]   ;;  %v3182_v54 = vld [vmem:[%s4437_s6 + $0x5b4] ss:$28 sps:$4 sm:$0xff]  }
 0x23e   :  { %v687_v0 = vmul.f32 0.2, %v640_v57  ;;  %v644_v1 = vpop.f32.mrb[3].mxu1  ;;  %v685_v2 = vpop.f32.mrb[7].mxu0  ;;  %v3185_v55 = vld [vmem:[%s4437_s6 + $0x5bc] ss:$28 sps:$4 sm:$0xff]  }
 0x23f   :  { %v688_v3 = vmul.f32 0.2, %v642_v60  ;;  %v690_v4 = vmul.f32 0.2, %v683_v61  ;;  %v3183_v58 = vld [vmem:[%s4437_s6 + $0x5b8] ss:$28 sps:$4 sm:$0xff]  }
 0x240   :  { %v691_v5 = vmax.f32 %v640_v57, %v687_v0  ;;  %v3180_v57 = vld [vmem:[%s4437_s6 + $0x5b0] ss:$28 sps:$4 sm:$0xff]   ;;  %v275_v63 = vsub.s32 2, %v3684_v29  ;;  %v3194_v0 = vld [vmem:[%s4437_s6 + $0x624] ss:$28 sps:$4 sm:$0xff]  }
 0x241   :  { %v692_v6 = vmax.f32 %v642_v60, %v688_v3  ;;  %v694_v7 = vmax.f32 %v683_v61, %v690_v4  ;;  %v3188_v59 = vld [vmem:[%s4437_s6 + $0x5ec] ss:$28 sps:$4 sm:$0xff]   ;;  %v3191_v60 = vld [vmem:[%s4437_s6 + $0x5f4] ss:$28 sps:$4 sm:$0xff]   ;;  %v3192_v2 = vld [vmem:[%s4437_s6 + $0x620] ss:$28 sps:$4 sm:$0xff]  }
 0x242   :  { %v3912_v11 = vpack.c.bf16 %v691_v5, %v691_v5  ;;  %v3186_v61 = vld [vmem:[%s4437_s6 + $0x5e8] ss:$28 sps:$4 sm:$0xff]   ;;  %v3189_v62 = vld [vmem:[%s4437_s6 + $0x5f0] ss:$28 sps:$4 sm:$0xff]   ;;  %v276_v4 = vrot.slane %v3892_v50, %v275_v63  ;;  %v3200_v5 = vld [vmem:[%s4437_s6 + $0x65c] ss:$28 sps:$4 sm:$0xff]  }
 0x243   :  { %v3904_v8 = vpack.c.bf16 %v692_v6, %v692_v6  ;;  %v3922_v14 = vpack.c.bf16 %v694_v7, %v694_v7  ;;  %v3197_v1 = vld [vmem:[%s4437_s6 + $0x62c] ss:$28 sps:$4 sm:$0xff]   ;;  %v3203_v6 = vld [vmem:[%s4437_s6 + $0x664] ss:$28 sps:$4 sm:$0xff]   ;;  %v3198_v7 = vld [vmem:[%s4437_s6 + $0x658] ss:$28 sps:$4 sm:$0xff]  }
 0x244   :  { %v3195_v3 = vld [vmem:[%s4437_s6 + $0x628] ss:$28 sps:$4 sm:$0xff]   ;;  %v3201_v50 = vld [vmem:[%s4437_s6 + $0x660] ss:$28 sps:$4 sm:$0xff]  }
 0x245   :  { %2176 = vmatprep.mubr.bf16.mxu1 %v3904_v8  ;;  %2258 = vmatprep.mubr.bf16.mxu0 %v3904_v8 }
 0x246   :  { %2177 = vmatmul.mubr.bf16.vlgmr.msra.gmra.mrb[4].mxu1 %v3912_v11  ;;  %2259 = vmatmul.mubr.bf16.vlgmr.msra.gmra.mrb[8].mxu0 %v3912_v11 }
 0x247   :  { %2186 = vmatpush1.bf16.msra.mxu1 %v3120_v9  ;;  %2268 = vmatpush1.bf16.msra.mxu0 %v3123_v10  ;;  %v681_v9 = vadd.f32 %v3902_v56, %v276_v4  ;;  %v3206_v10 = vld [vmem:[%s4437_s6 + $0x694] ss:$28 sps:$4 sm:$0xff]   ;;  %v3268_v4 = vld [vmem:[%s4437_s6 + $0x244] ss:$28 sps:$4 sm:$0xff]  }
 0x248   :  { %2217 = vmatprep.mubr.bf16.mxu1 %v3922_v14  ;;  %2299 = vmatprep.mubr.bf16.mxu0 %v3922_v14  ;;  %v3207_v56 = vld [vmem:[%s4437_s6 + $0x698] ss:$28 sps:$4 sm:$0xff]  }
 0x249   :  { %2187 = vmatprep.subr.bf16.mxu1 %v3128_v12  ;;  %2269 = vmatprep.subr.bf16.mxu0 %v3131_v13  ;;  %v3209_v12 = vld [vmem:[%s4437_s6 + $0x69c] ss:$28 sps:$4 sm:$0xff]   ;;  %v3204_v13 = vld [vmem:[%s4437_s6 + $0x690] ss:$28 sps:$4 sm:$0xff]  }
 0x24b   :  { %2188 = vmatpush1.bf16.msra.mxu1 %v3126_v15  ;;  %2270 = vmatpush1.bf16.msra.mxu0 %v3129_v16  ;;  %v689_v15 = vmul.f32 0.2, %v681_v9  ;;  %v3212_v16 = vld [vmem:[%s4437_s6 + $0x6cc] ss:$28 sps:$4 sm:$0xff]  }
 0x24c   :  { %2189 = vmatprep.subr.bf16.mxu1 %v3134_v17  ;;  %2271 = vmatprep.subr.bf16.mxu0 %v3137_v18  ;;  %v3215_v17 = vld [vmem:[%s4437_s6 + $0x6d4] ss:$28 sps:$4 sm:$0xff]   ;;  %v3210_v18 = vld [vmem:[%s4437_s6 + $0x6c8] ss:$28 sps:$4 sm:$0xff]  }
 0x24f   :  { %2190 = vmatpush1.bf16.msra.mxu1 %v3132_v19  ;;  %2272 = vmatpush1.bf16.msra.mxu0 %v3135_v20  ;;  %v3213_v19 = vld [vmem:[%s4437_s6 + $0x6d0] ss:$28 sps:$4 sm:$0xff]   ;;  %v693_v20 = vmax.f32 %v681_v9, %v689_v15  ;;  %v3274_v9 = vld [vmem:[%s4437_s6 + $0x600] ss:$28 sps:$4 sm:$0xff]  }
 0x250   :  { %2191 = vmatprep.subr.bf16.mxu1 %v3140_v21  ;;  %2273 = vmatprep.subr.bf16.mxu0 %v3143_v22  ;;  %v3218_v21 = vld [vmem:[%s4437_s6 + $0x14] ss:$28 sps:$4 sm:$0xff]  }
 0x251   :  { %v3219_v22 = vld [vmem:[%s4437_s6 + $0x1d8] ss:$28 sps:$4 sm:$0xff]   ;;  %v3276_v15 = vld [vmem:[%s4437_s6 + $0x2b0] ss:$28 sps:$4 sm:$0xff]  }
 0x253   :  { %2192 = vmatpush1.bf16.msra.mxu1 %v3138_v23  ;;  %2274 = vmatpush1.bf16.msra.mxu0 %v3141_v24  ;;  %v3216_v23 = vld [vmem:[%s4437_s6 + $0x10] ss:$28 sps:$4 sm:$0xff]   ;;  %v4116_v24 = vpack.c.bf16 %v693_v20, %v693_v20 }
 0x254   :  { %2193 = vmatprep.subr.bf16.mxu1 %v3146_v25  ;;  %2275 = vmatprep.subr.bf16.mxu0 %v3149_v26  ;;  %v3220_v25 = vld [vmem:[%s4437_s6 + $0x18] ss:$28 sps:$4 sm:$0xff]   ;;  %v3223_v26 = vld [vmem:[%s4437_s6 + $0x4c] ss:$28 sps:$4 sm:$0xff]  }
 0x255   :  { %v3285_v20 = vld [vmem:[%s4437_s6 + $0x4b0] ss:$28 sps:$4 sm:$0xff]  }
 0x257   :  { %2194 = vmatpush1.bf16.msra.mxu1 %v3144_v27  ;;  %2276 = vmatpush1.bf16.msra.mxu0 %v3147_v28  ;;  %v3224_v27 = vld [vmem:[%s4437_s6 + $0x210] ss:$28 sps:$4 sm:$0xff]   ;;  %v3221_v28 = vld [vmem:[%s4437_s6 + $0x48] ss:$28 sps:$4 sm:$0xff]  }
 0x258   :  { %2195 = vmatprep.subr.bf16.mxu1 %v3152_v31  ;;  %2277 = vmatprep.subr.bf16.mxu0 %v3155_v33  ;;  %v3225_v31 = vld [vmem:[%s4437_s6 + $0x50] ss:$28 sps:$4 sm:$0xff]   ;;  %v3228_v33 = vld [vmem:[%s4437_s6 + $0x84] ss:$28 sps:$4 sm:$0xff]  }
 0x25b   :  { %2196 = vmatpush1.bf16.msra.mxu1 %v3150_v34  ;;  %2278 = vmatpush1.bf16.msra.mxu0 %v3153_v35  ;;  %v3229_v34 = vld [vmem:[%s4437_s6 + $0x248] ss:$28 sps:$4 sm:$0xff]   ;;  %v3226_v35 = vld [vmem:[%s4437_s6 + $0x80] ss:$28 sps:$4 sm:$0xff]  }
 0x25c   :  { %2197 = vmatprep.subr.bf16.mxu1 %v3158_v36  ;;  %2279 = vmatprep.subr.bf16.mxu0 %v3161_v37  ;;  %v3233_v36 = vld [vmem:[%s4437_s6 + $0xbc] ss:$28 sps:$4 sm:$0xff]  }
 0x25d   :  { %v3234_v37 = vld [vmem:[%s4437_s6 + $0x280] ss:$28 sps:$4 sm:$0xff]  }
 0x25f   :  { %2198 = vmatpush1.bf16.msra.mxu1 %v3156_v38  ;;  %2280 = vmatpush1.bf16.msra.mxu0 %v3159_v39  ;;  %v3231_v38 = vld [vmem:[%s4437_s6 + $0xb8] ss:$28 sps:$4 sm:$0xff]   ;;  %v3235_v39 = vld [vmem:[%s4437_s6 + $0xc0] ss:$28 sps:$4 sm:$0xff]  }
 0x260   :  { %2199 = vmatprep.subr.bf16.mxu1 %v3164_v40  ;;  %2281 = vmatprep.subr.bf16.mxu0 %v3167_v41  ;;  %v3238_v40 = vld [vmem:[%s4437_s6 + $0xf4] ss:$28 sps:$4 sm:$0xff]  }
 0x261   :  { %v3239_v41 = vld [vmem:[%s4437_s6 + $0x2b8] ss:$28 sps:$4 sm:$0xff]  }
 0x263   :  { %2200 = vmatpush1.bf16.msra.mxu1 %v3162_v42  ;;  %2282 = vmatpush1.bf16.msra.mxu0 %v3165_v43  ;;  %v3236_v42 = vld [vmem:[%s4437_s6 + $0xf0] ss:$28 sps:$4 sm:$0xff]   ;;  %v3240_v43 = vld [vmem:[%s4437_s6 + $0xf8] ss:$28 sps:$4 sm:$0xff]  }
 0x264   :  { %2201 = vmatprep.subr.bf16.mxu1 %v3170_v44  ;;  %2283 = vmatprep.subr.bf16.mxu0 %v3173_v45  ;;  %v3243_v44 = vld [vmem:[%s4437_s6 + $0x12c] ss:$28 sps:$4 sm:$0xff]  }
 0x265   :  { %v3244_v45 = vld [vmem:[%s4437_s6 + $0x2f0] ss:$28 sps:$4 sm:$0xff]  }
 0x267   :  { %2202 = vmatpush1.bf16.msra.mxu1 %v3168_v46  ;;  %2284 = vmatpush1.bf16.msra.mxu0 %v3171_v47  ;;  %v3241_v46 = vld [vmem:[%s4437_s6 + $0x128] ss:$28 sps:$4 sm:$0xff]   ;;  %v3245_v47 = vld [vmem:[%s4437_s6 + $0x130] ss:$28 sps:$4 sm:$0xff]  }
 0x268   :  { %2203 = vmatprep.subr.bf16.mxu1 %v3176_v48  ;;  %2285 = vmatprep.subr.bf16.mxu0 %v3179_v49  ;;  %v3248_v48 = vld [vmem:[%s4437_s6 + $0x164] ss:$28 sps:$4 sm:$0xff]  }
 0x269   :  { %v3249_v49 = vld [vmem:[%s4437_s6 + $0x328] ss:$28 sps:$4 sm:$0xff]  }
 0x26b   :  { %2204 = vmatpush1.bf16.msra.mxu1 %v3174_v52  ;;  %2286 = vmatpush1.bf16.msra.mxu0 %v3177_v53  ;;  %v3246_v52 = vld [vmem:[%s4437_s6 + $0x160] ss:$28 sps:$4 sm:$0xff]   ;;  %v3250_v53 = vld [vmem:[%s4437_s6 + $0x168] ss:$28 sps:$4 sm:$0xff]  }
 0x26c   :  { %2205 = vmatprep.subr.bf16.mxu1 %v3182_v54  ;;  %2287 = vmatprep.subr.bf16.mxu0 %v3185_v55  ;;  %v3253_v54 = vld [vmem:[%s4437_s6 + $0x19c] ss:$28 sps:$4 sm:$0xff]  }
 0x26d   :  { %v3254_v55 = vld [vmem:[%s4437_s6 + $0x360] ss:$28 sps:$4 sm:$0xff]  }
 0x26f   :  { %2206 = vmatpush1.bf16.msra.mxu1 %v3180_v57  ;;  %2288 = vmatpush1.bf16.msra.mxu0 %v3183_v58  ;;  %v3251_v57 = vld [vmem:[%s4437_s6 + $0x198] ss:$28 sps:$4 sm:$0xff]   ;;  %v3255_v58 = vld [vmem:[%s4437_s6 + $0x1a0] ss:$28 sps:$4 sm:$0xff]  }
 0x270   :  { %2207 = vmatprep.subr.bf16.mxu1 %v3188_v59  ;;  %2289 = vmatprep.subr.bf16.mxu0 %v3191_v60  ;;  %v3258_v59 = vld [vmem:[%s4437_s6 + $0x1d4] ss:$28 sps:$4 sm:$0xff]  }
 0x271   :  { %v3259_v60 = vld [vmem:[%s4437_s6 + $0x558] ss:$28 sps:$4 sm:$0xff]  }
 0x273   :  { %2208 = vmatpush1.bf16.msra.mxu1 %v3186_v61  ;;  %2290 = vmatpush1.bf16.msra.mxu0 %v3189_v62  ;;  %v3256_v61 = vld [vmem:[%s4437_s6 + $0x1d0] ss:$28 sps:$4 sm:$0xff]   ;;  %v3260_v62 = vld [vmem:[%s4437_s6 + $0x398] ss:$28 sps:$4 sm:$0xff]  }
 0x274   :  { %2209 = vmatprep.subr.bf16.mxu1 %v3194_v0  ;;  %2291 = vmatprep.subr.bf16.mxu0 %v3197_v1  ;;  %v3263_v0 = vld [vmem:[%s4437_s6 + $0x20c] ss:$28 sps:$4 sm:$0xff]  }
 0x275   :  { %v3264_v1 = vld [vmem:[%s4437_s6 + $0x590] ss:$28 sps:$4 sm:$0xff]  }
 0x277   :  { %2210 = vmatpush1.bf16.msra.mxu1 %v3192_v2  ;;  %2292 = vmatpush1.bf16.msra.mxu0 %v3195_v3  ;;  %v3261_v2 = vld [vmem:[%s4437_s6 + $0x208] ss:$28 sps:$4 sm:$0xff]   ;;  %v3265_v3 = vld [vmem:[%s4437_s6 + $0x3d0] ss:$28 sps:$4 sm:$0xff]  }
 0x278   :  { %2211 = vmatprep.subr.bf16.mxu1 %v3200_v5  ;;  %2293 = vmatprep.subr.bf16.mxu0 %v3203_v6  ;;  %v3269_v5 = vld [vmem:[%s4437_s6 + $0x5c8] ss:$28 sps:$4 sm:$0xff]   ;;  %v3266_v6 = vld [vmem:[%s4437_s6 + $0x240] ss:$28 sps:$4 sm:$0xff]  }
 0x27b   :  { %2212 = vmatpush1.bf16.msra.mxu1 %v3198_v7  ;;  %2294 = vmatpush1.bf16.msra.mxu0 %v3201_v50  ;;  %v3270_v7 = vld [vmem:[%s4437_s6 + $0x408] ss:$28 sps:$4 sm:$0xff]   ;;  %v3273_v50 = vld [vmem:[%s4437_s6 + $0x27c] ss:$28 sps:$4 sm:$0xff]  }
 0x27c   :  { %2213 = vmatprep.subr.bf16.mxu1 %v3206_v10  ;;  %2295 = vmatprep.subr.bf16.mxu0 %v3209_v12  ;;  %v3271_v10 = vld [vmem:[%s4437_s6 + $0x278] ss:$28 sps:$4 sm:$0xff]   ;;  %v3275_v12 = vld [vmem:[%s4437_s6 + $0x440] ss:$28 sps:$4 sm:$0xff]  }
 0x27f   :  { %2214 = vmatpush1.bf16.msra.mxu1 %v3204_v13  ;;  %2296 = vmatpush1.bf16.msra.mxu0 %v3207_v56  ;;  %v3278_v13 = vld [vmem:[%s4437_s6 + $0x2b4] ss:$28 sps:$4 sm:$0xff]  }
 0x280   :  { %2215 = vmatprep.subr.bf16.mxu1 %v3212_v16  ;;  %2297 = vmatprep.subr.bf16.mxu0 %v3215_v17  ;;  %v3279_v56 = vld [vmem:[%s4437_s6 + $0x638] ss:$28 sps:$4 sm:$0xff]   ;;  %v3283_v17 = vld [vmem:[%s4437_s6 + $0x2ec] ss:$28 sps:$4 sm:$0xff]  }
 0x281   :  { %v3280_v16 = vld [vmem:[%s4437_s6 + $0x478] ss:$28 sps:$4 sm:$0xff]  }
 0x283   :  { %2216 = vmatpush1.bf16.msra.mxu1 %v3210_v18  ;;  %2298 = vmatpush1.bf16.msra.mxu0 %v3213_v19  ;;  %v3284_v18 = vld [vmem:[%s4437_s6 + $0x670] ss:$28 sps:$4 sm:$0xff]   ;;  %v3281_v19 = vld [vmem:[%s4437_s6 + $0x2e8] ss:$28 sps:$4 sm:$0xff]  }
 0x284   :  { %2308 = vmatprep.subr.bf16.mxu1 %v3218_v21  ;;  %2838 = vmatprep.subr.bf16.mxu0 %v3219_v22  ;;  %v3288_v21 = vld [vmem:[%s4437_s6 + $0x324] ss:$28 sps:$4 sm:$0xff]  }
 0x285   :  { %v3289_v22 = vld [vmem:[%s4437_s6 + $0x6a8] ss:$28 sps:$4 sm:$0xff]  }
 0x286   :  { %2218 = vmatmul.mubr.bf16.vlgmr.msra.gmra.mrb[4].mxu1 %v4116_v24  ;;  %2300 = vmatmul.mubr.bf16.vlgmr.msra.gmra.mrb[8].mxu0 %v4116_v24 }
 0x287   :  { %2309 = vmatpush1.bf16.msra.mxu1 %v3216_v23  ;;  %2340 = vmatprep.mubr.bf16.mxu1 %v3904_v8  ;;  %v3286_v23 = vld [vmem:[%s4437_s6 + $0x320] ss:$28 sps:$4 sm:$0xff]  }
 0x288   :  { %2839 = vmatpush3.bf16.msra.mxu0 %v3220_v25  ;;  %2422 = vmatprep.mubr.bf16.mxu0 %v3904_v8  ;;  %v3230_v8 = vld [vmem:[%s4437_s6 + $0x88] ss:$28 sps:$4 sm:$0xff]  }
 0x289   :  { %2310 = vmatprep.subr.bf16.mxu1 %v3223_v26  ;;  %2840 = vmatprep.subr.bf16.mxu0 %v3224_v27  ;;  %v3290_v25 = vld [vmem:[%s4437_s6 + $0x4e8] ss:$28 sps:$4 sm:$0xff]   ;;  %v3293_v26 = vld [vmem:[%s4437_s6 + $0x35c] ss:$28 sps:$4 sm:$0xff]  }
 0x28a   :  { %v3294_v27 = vld [vmem:[%s4437_s6 + $0x6e0] ss:$28 sps:$4 sm:$0xff]  }
 0x28b   :  { %2311 = vmatpush1.bf16.msra.mxu1 %v3221_v28  ;;  %v3291_v28 = vld [vmem:[%s4437_s6 + $0x358] ss:$28 sps:$4 sm:$0xff]  }
 0x28c   :  { %2841 = vmatpush3.bf16.msra.mxu0 %v3225_v31  ;;  %2312 = vmatprep.subr.bf16.mxu1 %v3228_v33  ;;  %v3295_v31 = vld [vmem:[%s4437_s6 + $0x520] ss:$28 sps:$4 sm:$0xff]   ;;  %v3298_v33 = vld [vmem:[%s4437_s6 + $0x394] ss:$28 sps:$4 sm:$0xff]  }
 0x28d   :  { %2842 = vmatprep.subr.bf16.mxu0 %v3229_v34  ;;  %v3296_v34 = vld [vmem:[%s4437_s6 + $0x390] ss:$28 sps:$4 sm:$0xff]  }
 0x28f   :  { %2313 = vmatpush1.bf16.msra.mxu1 %v3226_v35  ;;  %v3301_v35 = vld [vmem:[%s4437_s6 + $0x3cc] ss:$28 sps:$4 sm:$0xff]  }
 0x290   :  { %2843 = vmatpush3.bf16.msra.mxu0 %v3230_v8  ;;  %2314 = vmatprep.subr.bf16.mxu1 %v3233_v36  ;;  %v3299_v8 = vld [vmem:[%s4437_s6 + $0x3c8] ss:$28 sps:$4 sm:$0xff]  }
 0x291   :  { %2844 = vmatprep.subr.bf16.mxu0 %v3234_v37  ;;  %v3304_v36 = vld [vmem:[%s4437_s6 + $0x404] ss:$28 sps:$4 sm:$0xff]  }
 0x292   :  { %v3302_v37 = vld [vmem:[%s4437_s6 + $0x400] ss:$28 sps:$4 sm:$0xff]  }
 0x293   :  { %2315 = vmatpush1.bf16.msra.mxu1 %v3231_v38  ;;  %v3310_v38 = vld [vmem:[%s4437_s6 + $0x474] ss:$28 sps:$4 sm:$0xff]  }
 0x294   :  { %2845 = vmatpush3.bf16.msra.mxu0 %v3235_v39  ;;  %2316 = vmatprep.subr.bf16.mxu1 %v3238_v40  ;;  %v3308_v39 = vld [vmem:[%s4437_s6 + $0x470] ss:$28 sps:$4 sm:$0xff]  }
 0x295   :  { %2846 = vmatprep.subr.bf16.mxu0 %v3239_v41  ;;  %v3313_v40 = vld [vmem:[%s4437_s6 + $0x4ac] ss:$28 sps:$4 sm:$0xff]  }
 0x296   :  { %v3311_v41 = vld [vmem:[%s4437_s6 + $0x4a8] ss:$28 sps:$4 sm:$0xff]  }
 0x297   :  { %2317 = vmatpush1.bf16.msra.mxu1 %v3236_v42  ;;  %v3316_v42 = vld [vmem:[%s4437_s6 + $0x4e4] ss:$28 sps:$4 sm:$0xff]  }
 0x298   :  { %2847 = vmatpush3.bf16.msra.mxu0 %v3240_v43  ;;  %2318 = vmatprep.subr.bf16.mxu1 %v3243_v44  ;;  %v3314_v43 = vld [vmem:[%s4437_s6 + $0x4e0] ss:$28 sps:$4 sm:$0xff]  }
 0x299   :  { %2848 = vmatprep.subr.bf16.mxu0 %v3244_v45  ;;  %v3319_v44 = vld [vmem:[%s4437_s6 + $0x51c] ss:$28 sps:$4 sm:$0xff]  }
 0x29a   :  { %v3317_v45 = vld [vmem:[%s4437_s6 + $0x518] ss:$28 sps:$4 sm:$0xff]  }
 0x29b   :  { %2319 = vmatpush1.bf16.msra.mxu1 %v3241_v46  ;;  %v3322_v46 = vld [vmem:[%s4437_s6 + $0x554] ss:$28 sps:$4 sm:$0xff]  }
 0x29c   :  { %2849 = vmatpush3.bf16.msra.mxu0 %v3245_v47  ;;  %2320 = vmatprep.subr.bf16.mxu1 %v3248_v48  ;;  %v3320_v47 = vld [vmem:[%s4437_s6 + $0x550] ss:$28 sps:$4 sm:$0xff]  }
 0x29d   :  { %2850 = vmatprep.subr.bf16.mxu0 %v3249_v49  ;;  %v3325_v48 = vld [vmem:[%s4437_s6 + $0x58c] ss:$28 sps:$4 sm:$0xff]  }
 0x29e   :  { %v3323_v49 = vld [vmem:[%s4437_s6 + $0x588] ss:$28 sps:$4 sm:$0xff]  }
 0x29f   :  { %2321 = vmatpush1.bf16.msra.mxu1 %v3246_v52  ;;  %v3328_v52 = vld [vmem:[%s4437_s6 + $0x5c4] ss:$28 sps:$4 sm:$0xff]  }
 0x2a0   :  { %2851 = vmatpush3.bf16.msra.mxu0 %v3250_v53  ;;  %2322 = vmatprep.subr.bf16.mxu1 %v3253_v54  ;;  %v3326_v53 = vld [vmem:[%s4437_s6 + $0x5c0] ss:$28 sps:$4 sm:$0xff]  }
 0x2a1   :  { %2852 = vmatprep.subr.bf16.mxu0 %v3254_v55  ;;  %v3331_v54 = vld [vmem:[%s4437_s6 + $0x5fc] ss:$28 sps:$4 sm:$0xff]  }
 0x2a2   :  { %v3329_v55 = vld [vmem:[%s4437_s6 + $0x5f8] ss:$28 sps:$4 sm:$0xff]  }
 0x2a3   :  { %2323 = vmatpush1.bf16.msra.mxu1 %v3251_v57  ;;  %v3334_v57 = vld [vmem:[%s4437_s6 + $0x634] ss:$28 sps:$4 sm:$0xff]  }
 0x2a4   :  { %2853 = vmatpush3.bf16.msra.mxu0 %v3255_v58  ;;  %2324 = vmatprep.subr.bf16.mxu1 %v3258_v59  ;;  %v3332_v58 = vld [vmem:[%s4437_s6 + $0x630] ss:$28 sps:$4 sm:$0xff]  }
 0x2a5   :  { %2860 = vmatprep.subr.bf16.mxu0 %v3259_v60  ;;  %v3337_v59 = vld [vmem:[%s4437_s6 + $0x66c] ss:$28 sps:$4 sm:$0xff]  }
 0x2a6   :  { %v3335_v60 = vld [vmem:[%s4437_s6 + $0x668] ss:$28 sps:$4 sm:$0xff]  }
 0x2a7   :  { %2423 = vmatmul.mubr.bf16.vlgmr.msra.gmra.mrb[12].mxu0 %v3912_v11  ;;  %2325 = vmatpush1.bf16.msra.mxu1 %v3256_v61  ;;  %v3340_v61 = vld [vmem:[%s4437_s6 + $0x6a4] ss:$28 sps:$4 sm:$0xff]  }
 0x2a8   :  { %2861 = vmatpush3.bf16.msra.mxu0 %v3260_v62  ;;  %2462 = vmatprep.mubr.bf16.mxu0 %v3922_v14  ;;  %v3338_v62 = vld [vmem:[%s4437_s6 + $0x6a0] ss:$28 sps:$4 sm:$0xff]  }
 0x2a9   :  { %2326 = vmatprep.subr.bf16.mxu1 %v3263_v0  ;;  %2862 = vmatprep.subr.bf16.mxu0 %v3264_v1  ;;  %v3343_v0 = vld [vmem:[%s4437_s6 + $0x6dc] ss:$28 sps:$4 sm:$0xff]  }
 0x2aa   :  { %v3341_v1 = vld [vmem:[%s4437_s6 + $0x6d8] ss:$28 sps:$4 sm:$0xff]  }
 0x2ab   :  { %2327 = vmatpush1.bf16.msra.mxu1 %v3261_v2  ;;  %v955_v2 = vld [vmem:[%s4438_s7] sm:$0x7f] }
 0x2ac   :  { %2863 = vmatpush3.bf16.msra.mxu0 %v3265_v3  ;;  %2328 = vmatprep.subr.bf16.mxu1 %v3268_v4  ;;  %v960_v3 = vrot.slane %v955_v2, %v3687_v30  ;;  %v968_v4 = vrot.slane %v955_v2, %v275_v63 }
 0x2ad   :  { %2864 = vmatprep.subr.bf16.mxu0 %v3269_v5  ;;  %v964_v5 = vrot.slane %v955_v2, %v3693_v32 }
 0x2af   :  { %2329 = vmatpush1.bf16.msra.mxu1 %v3266_v6  ;;  %v972_v6 = vrot.slane %v955_v2, %v279_v51 }
 0x2b0   :  { %2865 = vmatpush3.bf16.msra.mxu0 %v3270_v7  ;;  %2330 = vmatprep.subr.bf16.mxu1 %v3273_v50 }
 0x2b1   :  { %2866 = vmatprep.subr.bf16.mxu0 %v3274_v9 }
 0x2b3   :  { %2331 = vmatpush1.bf16.msra.mxu1 %v3271_v10 }
 0x2b4   :  { %2867 = vmatpush3.bf16.msra.mxu0 %v3275_v12  ;;  %2332 = vmatprep.subr.bf16.mxu1 %v3278_v13 }
 0x2b5   :  { %2868 = vmatprep.subr.bf16.mxu0 %v3279_v56 }
 0x2b7   :  { %2333 = vmatpush1.bf16.msra.mxu1 %v3276_v15 }
 0x2b8   :  { %2869 = vmatpush3.bf16.msra.mxu0 %v3280_v16  ;;  %2334 = vmatprep.subr.bf16.mxu1 %v3283_v17 }
 0x2b9   :  { %2870 = vmatprep.subr.bf16.mxu0 %v3284_v18 }
 0x2bb   :  { %2335 = vmatpush1.bf16.msra.mxu1 %v3281_v19 }
 0x2bc   :  { %2871 = vmatpush3.bf16.msra.mxu0 %v3285_v20  ;;  %2336 = vmatprep.subr.bf16.mxu1 %v3288_v21 }
 0x2bd   :  { %2872 = vmatprep.subr.bf16.mxu0 %v3289_v22 }
 0x2bf   :  { %2337 = vmatpush1.bf16.msra.mxu1 %v3286_v23 }
 0x2c0   :  { %2873 = vmatpush3.bf16.msra.mxu0 %v3290_v25  ;;  %2338 = vmatprep.subr.bf16.mxu1 %v3293_v26 }
 0x2c1   :  { %2874 = vmatprep.subr.bf16.mxu0 %v3294_v27  ;;  %v983_v27 = vsub.s32 6, %v3684_v29 }
 0x2c3   :  { %2339 = vmatpush1.bf16.msra.mxu1 %v3291_v28  ;;  %v984_v28 = vrot.slane %v955_v2, %v983_v27 }
 0x2c4   :  { %2875 = vmatpush3.bf16.msra.mxu0 %v3295_v31  ;;  %2349 = vmatprep.subr.bf16.mxu1 %v3298_v33 }
 0x2c6   :  { %2341 = vmatmul.mubr.bf16.vlgmr.msra.gmra.mrb[8].mxu1 %v3912_v11  ;;  %v3307_v11 = vld [vmem:[%s4437_s6 + $0x43c] ss:$28 sps:$4 sm:$0xff]  }
 0x2c7   :  { %2463 = vmatmul.mubr.bf16.vlgmr.msra.gmra.mrb[16].mxu0 %v4116_v24  ;;  %2350 = vmatpush1.bf16.msra.mxu1 %v3296_v34 }
 0x2c8   :  { %2381 = vmatprep.mubr.bf16.mxu1 %v3922_v14  ;;  %2351 = vmatprep.subr.bf16.mxu1 %v3301_v35  ;;  %v3305_v14 = vld [vmem:[%s4437_s6 + $0x438] ss:$28 sps:$4 sm:$0xff]   ;;  %s3384_s6 = smov [#allocation2]  }
 0x2c9   :  { %s2517_s7 = sshll.u32 %s3384_s6, 4  ;;  %s2518_s7 = int_to_ptr.vmem [resolvable:$true] %s2517_s7 }
 0x2ca   :  { %s3358_s30 = scalar_lea.vmem %s2518_s7, 448  ;;  %p3363_p1 = scmp.lt.s32.totalorder %s2518_s7, %s2518_s7 }
 0x2cb   :  { %2352 = vmatpush1.bf16.msra.mxu1 %v3299_v8  ;;  %p3359_p0 = scmp.ne.s32.totalorder %s2518_s7, %s3358_s30  ;;  %p3364_p2 = scmp.lt.s32.totalorder %s3358_s30, %s3358_s30 }
 0x2cc   :  { %2353 = vmatprep.subr.bf16.mxu1 %v3304_v36 }
 0x2cd   :  { %p3365_p3 = por %p3364_p2, %p3363_p1 }
 0x2cf   :  { %2354 = vmatpush1.bf16.msra.mxu1 %v3302_v37  ;;  %p3366_p4 = pnand %p3365_p3, %p3359_p0 }
 0x2d0   :  { %2355 = vmatprep.subr.bf16.mxu1 %v3307_v11 }
 0x2d3   :  { %2356 = vmatpush1.bf16.msra.mxu1 %v3305_v14 }
 0x2d4   :  { %2357 = vmatprep.subr.bf16.mxu1 %v3310_v38  ;;  %v975_v38 = vsub.s32 4, %v3684_v29 }
 0x2d7   :  { %2358 = vmatpush1.bf16.msra.mxu1 %v3308_v39  ;;  %v979_v39 = vsub.s32 5, %v3684_v29 }
 0x2d8   :  { %2359 = vmatprep.subr.bf16.mxu1 %v3313_v40  ;;  %v976_v40 = vrot.slane %v955_v2, %v975_v38 }
 0x2db   :  { %2360 = vmatpush1.bf16.msra.mxu1 %v3311_v41  ;;  %v980_v41 = vrot.slane %v955_v2, %v979_v39 }
 0x2dc   :  { %2361 = vmatprep.subr.bf16.mxu1 %v3316_v42 }
 0x2df   :  { %2362 = vmatpush1.bf16.msra.mxu1 %v3314_v43 }
 0x2e0   :  { %2363 = vmatprep.subr.bf16.mxu1 %v3319_v44 }
 0x2e3   :  { %2364 = vmatpush1.bf16.msra.mxu1 %v3317_v45 }
 0x2e4   :  { %2365 = vmatprep.subr.bf16.mxu1 %v3322_v46 }
 0x2e7   :  { %2366 = vmatpush1.bf16.msra.mxu1 %v3320_v47 }
 0x2e8   :  { %2367 = vmatprep.subr.bf16.mxu1 %v3325_v48 }
 0x2eb   :  { %2368 = vmatpush1.bf16.msra.mxu1 %v3323_v49 }
 0x2ec   :  { %2369 = vmatprep.subr.bf16.mxu1 %v3328_v52 }
 0x2ef   :  { %2370 = vmatpush1.bf16.msra.mxu1 %v3326_v53 }
 0x2f0   :  { %2371 = vmatprep.subr.bf16.mxu1 %v3331_v54 }
 0x2f3   :  { %2372 = vmatpush1.bf16.msra.mxu1 %v3329_v55 }
 0x2f4   :  { %2373 = vmatprep.subr.bf16.mxu1 %v3334_v57 }
 0x2f7   :  { %2374 = vmatpush1.bf16.msra.mxu1 %v3332_v58 }
 0x2f8   :  { %2375 = vmatprep.subr.bf16.mxu1 %v3337_v59 }
 0x2fb   :  { %2376 = vmatpush1.bf16.msra.mxu1 %v3335_v60 }
 0x2fc   :  { %2377 = vmatprep.subr.bf16.mxu1 %v3340_v61 }
 0x2ff   :  { %2378 = vmatpush1.bf16.msra.mxu1 %v3338_v62 }
 0x300   :  { %2379 = vmatprep.subr.bf16.mxu1 %v3343_v0 }
 0x303   :  { %2380 = vmatpush1.bf16.msra.mxu1 %v3341_v1 }
 0x306   :  { %2382 = vmatmul.mubr.bf16.vlgmr.msra.gmra.mrb[8].mxu1 %v4116_v24 }
 0x359   :  { %v2219_v7 = vpop.f32.mrb[4].mxu1  ;;  %v2301_v50 = vpop.f32.mrb[8].mxu0 }
 0x35a   :  { %v2882_v9 = vadd.f32 %v2219_v7, %v960_v3  ;;  %v2884_v10 = vadd.f32 %v2301_v50, %v968_v4  ;;  %v2221_v12 = vpop.f32.mrb[5].mxu1  ;;  %v2303_v24 = vpop.f32.mrb[9].mxu0 }
 0x35b   :  { %v2883_v13 = vadd.f32 %v2221_v12, %v964_v5  ;;  %v2885_v56 = vadd.f32 %v2303_v24, %v972_v6  ;;  %v2223_v15 = vpop.f32.mrb[6].mxu1  ;;  %v2305_v16 = vpop.f32.mrb[10].mxu0 }
 0x35c   :  { %3344 = vtanh.f32 %v2882_v9  ;;  %v2224_v30 = vpop.f32.mrb[7].mxu1  ;;  %v2306_v17 = vpop.f32.mrb[11].mxu0 }
 0x35d   :  { %3346 = vtanh.f32 %v2884_v10 }
 0x35e   :  { %3348 = vtanh.f32 %v2883_v13 }
 0x35f   :  { %3350 = vtanh.f32 %v2885_v56 }
 0x366   :  { %v3345_v32 = vpop.eup %3344 }
 0x367   :  { %v3347_v63 = vpop.eup %3346 }
 0x368   :  { %v3349_v18 = vpop.eup %3348 }
 0x369   :  { %v3351_v51 = vpop.eup %3350  ;;  %v2834_v19 = vpack.c.bf16 %v3349_v18, %v3345_v32 }
 0x36a   :  { %v2835_v20 = vpack.c.bf16 %v3351_v51, %v3347_v63 }
 0x36b   :  { %2506 = vst [vmem:[#allocation2] sm:$0xff] %v2834_v19 }
 0x36c   :  { %2507 = vst [vmem:[#allocation2 + $0x8] sm:$0xff] %v2835_v20 }
 0x37a   :  { %v2854_v21 = vpop.f32.mrb[12].mxu0 }
 0x37b   :  { %v2855_v22 = vpop.f32.mrb[13].mxu0 }
 0x37c   :  { %v2856_v23 = vadd.f32 %v2855_v22, %v2854_v21  ;;  %v2857_v25 = vpop.f32.mrb[14].mxu0 }
 0x37d   :  { %v2858_v26 = vpop.f32.mrb[15].mxu0 }
 0x37e   :  { %v2425_v34 = vadd.f32 %v2856_v23, %v984_v28 }
 0x39a   :  { %v2876_v31 = vpop.f32.mrb[16].mxu0 }
 0x39b   :  { %v2877_v33 = vpop.f32.mrb[17].mxu0 }
 0x39c   :  { %v2878_v35 = vadd.f32 %v2877_v33, %v2876_v31  ;;  %v2879_v8 = vpop.f32.mrb[18].mxu0 }
 0x39d   :  { %v2880_v36 = vpop.f32.mrb[19].mxu0 }
 0x39e   :  { %v2465_v37 = vadd.f32 %v2878_v35, %v2425_v34 }
 0x3a0   :  { %3352 = vtanh.f32 %v2465_v37 }
 0x3aa   :  { %v3353_v11 = vpop.eup %3352 }
 0x3ab   :  { %v2837_v14 = vpack.c.bf16 %v3353_v11, %v3353_v11 }
 0x3ad   :  { %2510 = vst.msk [vmem:[#allocation2 + $0x18] sm:$0xf] %vm2509_vm1, %v2837_v14 }
 0x3d9   :  { %v2383_v42 = vpop.f32.mrb[8].mxu1 }
 0x3da   :  { %v2886_v43 = vadd.f32 %v2383_v42, %v976_v40  ;;  %v2385_v44 = vpop.f32.mrb[9].mxu1 }
 0x3db   :  { %v2887_v45 = vadd.f32 %v2385_v44, %v980_v41  ;;  %v2387_v46 = vpop.f32.mrb[10].mxu1 }
 0x3dc   :  { %3354 = vtanh.f32 %v2886_v43  ;;  %v2388_v47 = vpop.f32.mrb[11].mxu1 }
 0x3dd   :  { %3356 = vtanh.f32 %v2887_v45 }
 0x3e6   :  { %v3355_v48 = vpop.eup %3354 }
 0x3e7   :  { %v3357_v49 = vpop.eup %3356 }
 0x3e8   :  { %v2836_v52 = vpack.c.bf16 %v3357_v49, %v3355_v48 }
 0x3ea   :  { %2508 = vst [vmem:[#allocation2 + $0x10] sm:$0xff] %v2836_v52 }
 0x3eb   :  { %3369 = shalt.err (!%p3366_p4)
}
 0x3ec   :  { %s3370_s10 = scalar_lea.hbm %s4439_s8, 448 }
 0x3ed   :  { %p3371_p5 = scmp.ne.s32.totalorder %s4439_s8, %s3370_s10  ;;  %p3374_p6 = scmp.lt.u32.totalorder %s3370_s10, %s4439_s8 }
 0x3ef   :  { %p3376_p7 = pnand %p3374_p6, %p3371_p5 }
 0x3f1   :  { %3379 = shalt.err (!%p3376_p7)
}
 0x3f2   :  { %2520 = dma.vmem_to_hbm [thread:$0]  %s2518_s7, 448, %s4439_s8, [#allocation3]  }
 0x3f3   :  { %3380 = dma.done.wait [#allocation3], 448  }
 0x3f4   :  { %3381 = vsyncadd [#allocation3], 4294966848 }
 0x3f5   :  { %2524 = vsyncpa [#allocation3], 1 }

</bundles_post_ra>
